<compile_context>
chip_gen: v6e
topology: v6e:2x2x1
jax: 0.10.0
libtpu: 0.0.40
codegen_flags: <defaults>
</compile_context>

<pallas_src>
import functools
import numpy as np
import jax
import jax.numpy as jnp
from jax.experimental import pallas as pl
from jax.experimental.pallas import tpu as pltpu

LOG_2PI = float(np.log(2.0 * np.pi))


def _stacked_nvp_kernel(k, hidden, n_pairs,
                        x_ref, w1_ref, b1_ref, w2s_ref, w2m_ref,
                        b2s_ref, b2m_ref,
                        z_ref, logpz_ref, lj_ref):
    """One grid step = one batch tile through ALL coupling layers."""
    H = hidden
    d = 2 * k
    cdt = w1_ref.dtype                       # MXU input dtype (f32 or bf16)

    x1 = x_ref[0].astype(jnp.float32)        # [k, tb]   first half
    x2 = x_ref[1].astype(jnp.float32)        # [k, tb]   second half
    tb = x1.shape[-1]

    def coupling(xc, xt, layer):
        # Fused sig|mu first Linear: one [2H,k]x[k,tb] dot; then two separate
        # [dk,H]x[H,tb] dots (no block-diagonal zeros).  All lane-dense in tb.
        h = jnp.dot(w1_ref[layer], xc.astype(cdt),
                    preferred_element_type=jnp.float32) + b1_ref[layer]
        h = jnp.where(h > 0, h, 0.01 * h)    # LeakyReLU(negative_slope=0.01)
        h = h.astype(cdt)
        sig = jnp.dot(w2s_ref[layer], h[:H, :],
                      preferred_element_type=jnp.float32) + b2s_ref[layer]
        mu = jnp.dot(w2m_ref[layer], h[H:, :],
                     preferred_element_type=jnp.float32) + b2m_ref[layer]
        yt = xt * jnp.exp(sig) + mu
        return yt, jnp.sum(sig, axis=0, keepdims=True)

    lj = jnp.zeros((1, tb), jnp.float32)
    for p in range(n_pairs):                 # static unroll; carries stay in vregs
        # layer 2p   (flip=False): condition on first half, transform second
        y2, s0 = coupling(x1, x2, 2 * p)
        # layer 2p+1 (flip=True): condition on new second half, transform first
        y0, s1 = coupling(y2, x1, 2 * p + 1)
        x1, x2 = y0, y2
        lj = lj + s0 + s1

    # single, lane-dense final stores
    z_ref[0] = x1
    z_ref[1] = x2
    lj_ref[...] = lj
    logpz_ref[...] = (-0.5 * (jnp.sum(x1 * x1, axis=0, keepdims=True)
                              + jnp.sum(x2 * x2, axis=0, keepdims=True))
                      - 0.5 * d * LOG_2PI)


def pack_params(params, matmul_dtype=jnp.float32):
    """Pad to an even layer count, fuse sig/mu first Linears, pre-transpose all
    weights for the [features, batch] layout.  Weight matrices take
    matmul_dtype; biases stay f32 (added after f32 accumulation)."""
    w1s, b1s, w2s, b2s = params["w1s"], params["b1s"], params["w2s"], params["b2s"]
    w1m, b1m, w2m, b2m = params["w1m"], params["b1m"], params["w2m"], params["b2m"]
    n = w1s.shape[0]

    if n % 2:  # pad with a zero (identity) layer so layers come in pairs
        pad = lambda a: jnp.concatenate(
            [a, jnp.zeros((1,) + a.shape[1:], a.dtype)], axis=0)
        w1s, b1s, w2s, b2s = map(pad, (w1s, b1s, w2s, b2s))
        w1m, b1m, w2m, b2m = map(pad, (w1m, b1m, w2m, b2m))

    f32 = jnp.float32
    w1 = jnp.swapaxes(jnp.concatenate([w1s, w1m], -1), 1, 2).astype(matmul_dtype)  # [n, 2H, k]
    b1 = jnp.swapaxes(jnp.concatenate([b1s, b1m], -1), 1, 2).astype(f32)           # [n, 2H, 1]
    w2s_t = jnp.swapaxes(w2s, 1, 2).astype(matmul_dtype)                            # [n, dk, H]
    w2m_t = jnp.swapaxes(w2m, 1, 2).astype(matmul_dtype)                            # [n, dk, H]
    b2s_t = jnp.swapaxes(b2s, 1, 2).astype(f32)                                     # [n, dk, 1]
    b2m_t = jnp.swapaxes(b2m, 1, 2).astype(f32)                                     # [n, dk, 1]
    return w1, b1, w2s_t, w2m_t, b2s_t, b2m_t


def stacked_nvp_forward(x, params, k, *, batch_tile=None,
                        matmul_dtype=jnp.float32):
    B, d = x.shape
    assert d == 2 * k, "stacked_NVP coupling requires d == 2*k"
    dk = d - k

    w1, b1, w2s_t, w2m_t, b2s_t, b2m_t = pack_params(params, matmul_dtype)
    n = w1.shape[0]                    # even (possibly identity-padded)
    n_pairs = n // 2
    H = w1.shape[1] // 2

    # Lane-dense batch tile: prefer a multiple of 128 (>= 2 tiles also feeds
    # both v7x TensorCores via the "parallel" axis); otherwise the full batch.
    if batch_tile is None:
        batch_tile = B
        for cand in (512, 256, 128):
            if B > cand and B % cand == 0:
                batch_tile = cand
                break
    tb = batch_tile
    assert tb == B or (B % tb == 0 and tb % 128 == 0), \
        "batch_tile must divide B and be a multiple of 128 (or equal B)"

    # Transposed, half-split layout: [2, k, B] (batch on the 128-lane axis).
    x3 = jnp.asarray(x, jnp.float32).T.reshape(2, k, B)

    grid = (B // tb,)

    def wspec(arr):  # full-array, constant index -> DMA'd once, VMEM-resident
        return pl.BlockSpec(arr.shape, lambda b, _nd=arr.ndim: (0,) * _nd)

    out_shapes = (jax.ShapeDtypeStruct((2, k, B), jnp.float32),
                  jax.ShapeDtypeStruct((1, B), jnp.float32),
                  jax.ShapeDtypeStruct((1, B), jnp.float32))

    weight_bytes = sum(int(np.prod(a.shape)) * a.dtype.itemsize
                       for a in (w1, b1, w2s_t, w2m_t, b2s_t, b2m_t))
    io_block_bytes = 2 * (d * tb * 4) + 2 * (2 * tb * 4)   # x + z blocks (+lj/logpz)
    need = weight_bytes + 2 * io_block_bytes                # double-buffered I/O
    vmem_limit = int(min(64 * 2**20, max(32 * 2**20, 4 * need)))

    flops = 2 * B * n * (2 * H * k + 2 * dk * H)            # the two dots per layer
    transcendentals = B * n * dk                             # exp(sig)
    bytes_accessed = (2 * B * d * 4) + (2 * B * 4) + weight_bytes

    z3, logpz, lj = pl.pallas_call(
        functools.partial(_stacked_nvp_kernel, k, H, n_pairs),
        out_shape=out_shapes,
        grid_spec=pltpu.PrefetchScalarGridSpec(
            num_scalar_prefetch=0,
            grid=grid,
            in_specs=[pl.BlockSpec((2, k, tb), lambda b: (0, 0, b)),
                      wspec(w1), wspec(b1),
                      wspec(w2s_t), wspec(w2m_t),
                      wspec(b2s_t), wspec(b2m_t)],
            out_specs=(pl.BlockSpec((2, k, tb), lambda b: (0, 0, b)),
                       pl.BlockSpec((1, tb), lambda b: (0, b)),
                       pl.BlockSpec((1, tb), lambda b: (0, b)))),
        compiler_params=pltpu.CompilerParams(
            dimension_semantics=("parallel",),
            vmem_limit_bytes=vmem_limit),
        cost_estimate=pl.CostEstimate(flops=flops,
                                      transcendentals=transcendentals,
                                      bytes_accessed=bytes_accessed),
    )(x3, w1, b1, w2s_t, w2m_t, b2s_t, b2m_t)

    z = z3.reshape(d, B).T
    return z, logpz[0], lj[0]


def init_params(key, d, k, hidden, n):
    """Deterministic params, PyTorch-Linear-style uniform(+-1/sqrt(fan_in))."""
    def lin(key, fan_in, fan_out):
        bound = 1.0 / np.sqrt(fan_in)
        kw, kb = jax.random.split(key)
        w = jax.random.uniform(kw, (fan_in, fan_out), jnp.float32, -bound, bound)
        b = jax.random.uniform(kb, (1, fan_out), jnp.float32, -bound, bound)
        return w, b

    keys = jax.random.split(key, n * 4).reshape(n, 4, 2)
    p = {name: [] for name in ("w1s", "b1s", "w2s", "b2s",
                               "w1m", "b1m", "w2m", "b2m")}
    for i in range(n):
        w, b = lin(keys[i, 0], k, hidden);      p["w1s"].append(w); p["b1s"].append(b)
        w, b = lin(keys[i, 1], hidden, d - k);  p["w2s"].append(w); p["b2s"].append(b)
        w, b = lin(keys[i, 2], k, hidden);      p["w1m"].append(w); p["b1m"].append(b)
        w, b = lin(keys[i, 3], hidden, d - k);  p["w2m"].append(w); p["b2m"].append(b)
    return {name: jnp.stack(v) for name, v in p.items()}


def ref_forward(x, params, k, matmul_dtype=jnp.float32):
    """Pure-JAX reference matching the PyTorch module (unpacked params)."""
    d = x.shape[-1]
    n = params["w1s"].shape[0]
    lj_total = jnp.zeros(x.shape[0], jnp.float32)
    log_pz = None
    for i in range(n):
        flip = (i % 2) == 1
        x1, x2 = x[:, :k], x[:, k:]
        if flip:
            x2, x1 = x1, x2

        def mlp(w1, b1, w2, b2):
            h = jnp.dot(x1.astype(matmul_dtype), w1.astype(matmul_dtype),
                        preferred_element_type=jnp.float32) + b1[0]
            h = jnp.where(h > 0, h, 0.01 * h)
            return jnp.dot(h.astype(matmul_dtype), w2.astype(matmul_dtype),
                           preferred_element_type=jnp.float32) + b2[0]

        sig = mlp(params["w1s"][i], params["b1s"][i], params["w2s"][i], params["b2s"][i])
        mu = mlp(params["w1m"][i], params["b1m"][i], params["w2m"][i], params["b2m"][i])
        z1, z2 = x1, x2 * jnp.exp(sig) + mu
        if flip:
            z2, z1 = z1, z2
        x = jnp.concatenate([z1, z2], axis=-1)
        log_pz = -0.5 * jnp.sum(x * x, axis=-1) - 0.5 * d * LOG_2PI
        lj_total = lj_total + jnp.sum(sig, axis=-1)
    return x, log_pz, lj_total


if __name__ == "__main__":
    B, d, k, hidden = 8, 4, 2, 32

    key = jax.random.PRNGKey(0)
    kx, kp = jax.random.split(key)
    x = jax.random.normal(kx, (B, d), jnp.float32)

    # even stack + odd stack (exercises the identity-layer padding)
    for n in (4, 3):
        params = init_params(kp, d, k, hidden, n)
        z, log_pz, log_jacob = stacked_nvp_forward(x, params, k)
        jax.block_until_ready((z, log_pz, log_jacob))

        z_r, lp_r, lj_r = ref_forward(x, params, k)
        assert np.allclose(np.asarray(z), np.asarray(z_r), rtol=1e-4, atol=1e-4)
        assert np.allclose(np.asarray(log_pz), np.asarray(lp_r), rtol=1e-4, atol=1e-4)
        assert np.allclose(np.asarray(log_jacob), np.asarray(lj_r), rtol=1e-4, atol=1e-4)

    # larger batch -> multiple lane-dense 128-wide tiles on the parallel grid axis
    B2 = 256
    x_big = jax.random.normal(jax.random.PRNGKey(1), (B2, d), jnp.float32)
    params = init_params(kp, d, k, hidden, 4)
    z, log_pz, log_jacob = stacked_nvp_forward(x_big, params, k)
    jax.block_until_ready((z, log_pz, log_jacob))
    z_r, lp_r, lj_r = ref_forward(x_big, params, k)
    assert np.allclose(np.asarray(z), np.asarray(z_r), rtol=1e-4, atol=1e-4)
    assert np.allclose(np.asarray(log_pz), np.asarray(lp_r), rtol=1e-4, atol=1e-4)
    assert np.allclose(np.asarray(log_jacob), np.asarray(lj_r), rtol=1e-4, atol=1e-4)

    # bf16 MXU path (bf16 weights/activations, f32 accumulation + elementwise),
    # compared against the reference using the same bf16 matmul precision.
    zb, lpb, ljb = stacked_nvp_forward(x_big, params, k, matmul_dtype=jnp.bfloat16)
    jax.block_until_ready((zb, lpb, ljb))
    z_rb, lp_rb, lj_rb = ref_forward(x_big, params, k, matmul_dtype=jnp.bfloat16)
    assert np.allclose(np.asarray(zb), np.asarray(z_rb), rtol=2e-2, atol=2e-2)
    assert np.allclose(np.asarray(lpb), np.asarray(lp_rb), rtol=2e-2, atol=2e-2)
    assert np.allclose(np.asarray(ljb), np.asarray(lj_rb), rtol=2e-2, atol=2e-2)

    print("KERNEL_OK")
</pallas_src>

<mosaic_0001>
module attributes {stable_mosaic.version = 11 : i64} {
  func.func @_stacked_nvp_kernel(%arg0: i32, %arg1: memref<2x2x8xf32, #tpu.memory_space<vmem>>, %arg2: memref<4x64x2xf32, #tpu.memory_space<vmem>>, %arg3: memref<4x64x1xf32, #tpu.memory_space<vmem>>, %arg4: memref<4x2x32xf32, #tpu.memory_space<vmem>>, %arg5: memref<4x2x32xf32, #tpu.memory_space<vmem>>, %arg6: memref<4x2x1xf32, #tpu.memory_space<vmem>>, %arg7: memref<4x2x1xf32, #tpu.memory_space<vmem>>, %arg8: memref<2x2x8xf32, #tpu.memory_space<vmem>>, %arg9: memref<1x8xf32, #tpu.memory_space<vmem>>, %arg10: memref<1x8xf32, #tpu.memory_space<vmem>>) attributes {dimension_semantics = [#tpu.dimension_semantics<parallel>], iteration_bounds = array<i64: 1>, scalar_prefetch = 0 : i64, scratch_operands = 0 : i64, tpu.core_type = #tpu.core_type<tc>, window_params = [{transform_indices = @transform_0, window_bounds = array<i64: 2, 2, 8>}, {pipeline_mode = #tpu.pipeline_mode<synchronous>, transform_indices = @transform_1, window_bounds = array<i64: 4, 64, 2>}, {pipeline_mode = #tpu.pipeline_mode<synchronous>, transform_indices = @transform_2, window_bounds = array<i64: 4, 64, 1>}, {pipeline_mode = #tpu.pipeline_mode<synchronous>, transform_indices = @transform_3, window_bounds = array<i64: 4, 2, 32>}, {pipeline_mode = #tpu.pipeline_mode<synchronous>, transform_indices = @transform_4, window_bounds = array<i64: 4, 2, 32>}, {pipeline_mode = #tpu.pipeline_mode<synchronous>, transform_indices = @transform_5, window_bounds = array<i64: 4, 2, 1>}, {pipeline_mode = #tpu.pipeline_mode<synchronous>, transform_indices = @transform_6, window_bounds = array<i64: 4, 2, 1>}, {transform_indices = @transform_7, window_bounds = array<i64: 2, 2, 8>}, {transform_indices = @transform_8, window_bounds = array<i64: 1, 8>}, {transform_indices = @transform_9, window_bounds = array<i64: 1, 8>}]} {
    %c0 = arith.constant 0 : index
    %c0_0 = arith.constant 0 : index
    %c0_1 = arith.constant 0 : index
    %0 = vector.load %arg1[%c0, %c0_0, %c0_1] : memref<2x2x8xf32, #tpu.memory_space<vmem>>, vector<1x2x8xf32>
    %1 = vector.shape_cast %0 : vector<1x2x8xf32> to vector<2x8xf32>
    %c1 = arith.constant 1 : index
    %c0_2 = arith.constant 0 : index
    %c0_3 = arith.constant 0 : index
    %2 = vector.load %arg1[%c1, %c0_2, %c0_3] : memref<2x2x8xf32, #tpu.memory_space<vmem>>, vector<1x2x8xf32>
    %3 = vector.shape_cast %2 : vector<1x2x8xf32> to vector<2x8xf32>
    %cst = arith.constant 0.000000e+00 : f32
    %4 = vector.broadcast %cst : f32 to vector<1x8xf32>
    %c0_4 = arith.constant 0 : index
    %c0_5 = arith.constant 0 : index
    %c0_6 = arith.constant 0 : index
    %5 = vector.load %arg2[%c0_4, %c0_5, %c0_6] : memref<4x64x2xf32, #tpu.memory_space<vmem>>, vector<1x64x2xf32>
    %6 = vector.shape_cast %5 : vector<1x64x2xf32> to vector<64x2xf32>
    %cst_7 = arith.constant dense<0.000000e+00> : vector<64x8xf32>
    %7 = tpu.matmul %6, %1, %cst_7 {dimension_numbers = #tpu.dot_dimension_numbers<[1], [0], [0], [1], [0, 0, 1, 1], [], []>} : vector<64x2xf32>, vector<2x8xf32>, vector<64x8xf32> -> vector<64x8xf32>
    %c0_8 = arith.constant 0 : index
    %c0_9 = arith.constant 0 : index
    %c0_10 = arith.constant 0 : index
    %8 = vector.load %arg3[%c0_8, %c0_9, %c0_10] : memref<4x64x1xf32, #tpu.memory_space<vmem>>, vector<1x64x1xf32>
    %9 = vector.shape_cast %8 : vector<1x64x1xf32> to vector<64x1xf32>
    %10 = vector.broadcast %9 : vector<64x1xf32> to vector<64x8xf32>
    %11 = arith.addf %7, %10 : vector<64x8xf32>
    %cst_11 = arith.constant 0.000000e+00 : f32
    %12 = vector.broadcast %cst_11 : f32 to vector<64x8xf32>
    %13 = arith.cmpf ogt, %11, %12 : vector<64x8xf32>
    %cst_12 = arith.constant 0.00999999977 : f32
    %14 = vector.broadcast %cst_12 : f32 to vector<64x8xf32>
    %15 = arith.mulf %14, %11 : vector<64x8xf32>
    %16 = arith.select %13, %11, %15 : vector<64x8xi1>, vector<64x8xf32>
    %c0_13 = arith.constant 0 : index
    %c0_14 = arith.constant 0 : index
    %c0_15 = arith.constant 0 : index
    %17 = vector.load %arg4[%c0_13, %c0_14, %c0_15] : memref<4x2x32xf32, #tpu.memory_space<vmem>>, vector<1x2x32xf32>
    %18 = vector.shape_cast %17 : vector<1x2x32xf32> to vector<2x32xf32>
    %19 = vector.extract_strided_slice %16 {offsets = [0, 0], sizes = [32, 8], strides = [1, 1]} : vector<64x8xf32> to vector<32x8xf32>
    %cst_16 = arith.constant dense<0.000000e+00> : vector<2x8xf32>
    %20 = tpu.matmul %18, %19, %cst_16 {dimension_numbers = #tpu.dot_dimension_numbers<[1], [0], [0], [1], [0, 0, 1, 1], [], []>} : vector<2x32xf32>, vector<32x8xf32>, vector<2x8xf32> -> vector<2x8xf32>
    %c0_17 = arith.constant 0 : index
    %c0_18 = arith.constant 0 : index
    %c0_19 = arith.constant 0 : index
    %21 = vector.load %arg6[%c0_17, %c0_18, %c0_19] : memref<4x2x1xf32, #tpu.memory_space<vmem>>, vector<1x2x1xf32>
    %22 = vector.shape_cast %21 : vector<1x2x1xf32> to vector<2x1xf32>
    %23 = vector.broadcast %22 : vector<2x1xf32> to vector<2x8xf32>
    %24 = arith.addf %20, %23 : vector<2x8xf32>
    %c0_20 = arith.constant 0 : index
    %c0_21 = arith.constant 0 : index
    %c0_22 = arith.constant 0 : index
    %25 = vector.load %arg5[%c0_20, %c0_21, %c0_22] : memref<4x2x32xf32, #tpu.memory_space<vmem>>, vector<1x2x32xf32>
    %26 = vector.shape_cast %25 : vector<1x2x32xf32> to vector<2x32xf32>
    %27 = vector.extract_strided_slice %16 {offsets = [32, 0], sizes = [32, 8], strides = [1, 1]} : vector<64x8xf32> to vector<32x8xf32>
    %cst_23 = arith.constant dense<0.000000e+00> : vector<2x8xf32>
    %28 = tpu.matmul %26, %27, %cst_23 {dimension_numbers = #tpu.dot_dimension_numbers<[1], [0], [0], [1], [0, 0, 1, 1], [], []>} : vector<2x32xf32>, vector<32x8xf32>, vector<2x8xf32> -> vector<2x8xf32>
    %c0_24 = arith.constant 0 : index
    %c0_25 = arith.constant 0 : index
    %c0_26 = arith.constant 0 : index
    %29 = vector.load %arg7[%c0_24, %c0_25, %c0_26] : memref<4x2x1xf32, #tpu.memory_space<vmem>>, vector<1x2x1xf32>
    %30 = vector.shape_cast %29 : vector<1x2x1xf32> to vector<2x1xf32>
    %31 = vector.broadcast %30 : vector<2x1xf32> to vector<2x8xf32>
    %32 = arith.addf %28, %31 : vector<2x8xf32>
    %33 = math.exp %24 : vector<2x8xf32>
    %34 = arith.mulf %3, %33 : vector<2x8xf32>
    %35 = arith.addf %34, %32 : vector<2x8xf32>
    %cst_27 = arith.constant dense<0.000000e+00> : vector<8xf32>
    %36 = vector.multi_reduction <add>, %24, %cst_27 [0] : vector<2x8xf32> to vector<8xf32>
    %37 = vector.shape_cast %36 : vector<8xf32> to vector<1x8xf32>
    %c1_28 = arith.constant 1 : index
    %c0_29 = arith.constant 0 : index
    %c0_30 = arith.constant 0 : index
    %38 = vector.load %arg2[%c1_28, %c0_29, %c0_30] : memref<4x64x2xf32, #tpu.memory_space<vmem>>, vector<1x64x2xf32>
    %39 = vector.shape_cast %38 : vector<1x64x2xf32> to vector<64x2xf32>
    %cst_31 = arith.constant dense<0.000000e+00> : vector<64x8xf32>
    %40 = tpu.matmul %39, %35, %cst_31 {dimension_numbers = #tpu.dot_dimension_numbers<[1], [0], [0], [1], [0, 0, 1, 1], [], []>} : vector<64x2xf32>, vector<2x8xf32>, vector<64x8xf32> -> vector<64x8xf32>
    %c1_32 = arith.constant 1 : index
    %c0_33 = arith.constant 0 : index
    %c0_34 = arith.constant 0 : index
    %41 = vector.load %arg3[%c1_32, %c0_33, %c0_34] : memref<4x64x1xf32, #tpu.memory_space<vmem>>, vector<1x64x1xf32>
    %42 = vector.shape_cast %41 : vector<1x64x1xf32> to vector<64x1xf32>
    %43 = vector.broadcast %42 : vector<64x1xf32> to vector<64x8xf32>
    %44 = arith.addf %40, %43 : vector<64x8xf32>
    %cst_35 = arith.constant 0.000000e+00 : f32
    %45 = vector.broadcast %cst_35 : f32 to vector<64x8xf32>
    %46 = arith.cmpf ogt, %44, %45 : vector<64x8xf32>
    %cst_36 = arith.constant 0.00999999977 : f32
    %47 = vector.broadcast %cst_36 : f32 to vector<64x8xf32>
    %48 = arith.mulf %47, %44 : vector<64x8xf32>
    %49 = arith.select %46, %44, %48 : vector<64x8xi1>, vector<64x8xf32>
    %c1_37 = arith.constant 1 : index
    %c0_38 = arith.constant 0 : index
    %c0_39 = arith.constant 0 : index
    %50 = vector.load %arg4[%c1_37, %c0_38, %c0_39] : memref<4x2x32xf32, #tpu.memory_space<vmem>>, vector<1x2x32xf32>
    %51 = vector.shape_cast %50 : vector<1x2x32xf32> to vector<2x32xf32>
    %52 = vector.extract_strided_slice %49 {offsets = [0, 0], sizes = [32, 8], strides = [1, 1]} : vector<64x8xf32> to vector<32x8xf32>
    %cst_40 = arith.constant dense<0.000000e+00> : vector<2x8xf32>
    %53 = tpu.matmul %51, %52, %cst_40 {dimension_numbers = #tpu.dot_dimension_numbers<[1], [0], [0], [1], [0, 0, 1, 1], [], []>} : vector<2x32xf32>, vector<32x8xf32>, vector<2x8xf32> -> vector<2x8xf32>
    %c1_41 = arith.constant 1 : index
    %c0_42 = arith.constant 0 : index
    %c0_43 = arith.constant 0 : index
    %54 = vector.load %arg6[%c1_41, %c0_42, %c0_43] : memref<4x2x1xf32, #tpu.memory_space<vmem>>, vector<1x2x1xf32>
    %55 = vector.shape_cast %54 : vector<1x2x1xf32> to vector<2x1xf32>
    %56 = vector.broadcast %55 : vector<2x1xf32> to vector<2x8xf32>
    %57 = arith.addf %53, %56 : vector<2x8xf32>
    %c1_44 = arith.constant 1 : index
    %c0_45 = arith.constant 0 : index
    %c0_46 = arith.constant 0 : index
    %58 = vector.load %arg5[%c1_44, %c0_45, %c0_46] : memref<4x2x32xf32, #tpu.memory_space<vmem>>, vector<1x2x32xf32>
    %59 = vector.shape_cast %58 : vector<1x2x32xf32> to vector<2x32xf32>
    %60 = vector.extract_strided_slice %49 {offsets = [32, 0], sizes = [32, 8], strides = [1, 1]} : vector<64x8xf32> to vector<32x8xf32>
    %cst_47 = arith.constant dense<0.000000e+00> : vector<2x8xf32>
    %61 = tpu.matmul %59, %60, %cst_47 {dimension_numbers = #tpu.dot_dimension_numbers<[1], [0], [0], [1], [0, 0, 1, 1], [], []>} : vector<2x32xf32>, vector<32x8xf32>, vector<2x8xf32> -> vector<2x8xf32>
    %c1_48 = arith.constant 1 : index
    %c0_49 = arith.constant 0 : index
    %c0_50 = arith.constant 0 : index
    %62 = vector.load %arg7[%c1_48, %c0_49, %c0_50] : memref<4x2x1xf32, #tpu.memory_space<vmem>>, vector<1x2x1xf32>
    %63 = vector.shape_cast %62 : vector<1x2x1xf32> to vector<2x1xf32>
    %64 = vector.broadcast %63 : vector<2x1xf32> to vector<2x8xf32>
    %65 = arith.addf %61, %64 : vector<2x8xf32>
    %66 = math.exp %57 : vector<2x8xf32>
    %67 = arith.mulf %1, %66 : vector<2x8xf32>
    %68 = arith.addf %67, %65 : vector<2x8xf32>
    %cst_51 = arith.constant dense<0.000000e+00> : vector<8xf32>
    %69 = vector.multi_reduction <add>, %57, %cst_51 [0] : vector<2x8xf32> to vector<8xf32>
    %70 = vector.shape_cast %69 : vector<8xf32> to vector<1x8xf32>
    %71 = arith.addf %4, %37 : vector<1x8xf32>
    %72 = arith.addf %71, %70 : vector<1x8xf32>
    %c2 = arith.constant 2 : index
    %c0_52 = arith.constant 0 : index
    %c0_53 = arith.constant 0 : index
    %73 = vector.load %arg2[%c2, %c0_52, %c0_53] : memref<4x64x2xf32, #tpu.memory_space<vmem>>, vector<1x64x2xf32>
    %74 = vector.shape_cast %73 : vector<1x64x2xf32> to vector<64x2xf32>
    %cst_54 = arith.constant dense<0.000000e+00> : vector<64x8xf32>
    %75 = tpu.matmul %74, %68, %cst_54 {dimension_numbers = #tpu.dot_dimension_numbers<[1], [0], [0], [1], [0, 0, 1, 1], [], []>} : vector<64x2xf32>, vector<2x8xf32>, vector<64x8xf32> -> vector<64x8xf32>
    %c2_55 = arith.constant 2 : index
    %c0_56 = arith.constant 0 : index
    %c0_57 = arith.constant 0 : index
    %76 = vector.load %arg3[%c2_55, %c0_56, %c0_57] : memref<4x64x1xf32, #tpu.memory_space<vmem>>, vector<1x64x1xf32>
    %77 = vector.shape_cast %76 : vector<1x64x1xf32> to vector<64x1xf32>
    %78 = vector.broadcast %77 : vector<64x1xf32> to vector<64x8xf32>
    %79 = arith.addf %75, %78 : vector<64x8xf32>
    %cst_58 = arith.constant 0.000000e+00 : f32
    %80 = vector.broadcast %cst_58 : f32 to vector<64x8xf32>
    %81 = arith.cmpf ogt, %79, %80 : vector<64x8xf32>
    %cst_59 = arith.constant 0.00999999977 : f32
    %82 = vector.broadcast %cst_59 : f32 to vector<64x8xf32>
    %83 = arith.mulf %82, %79 : vector<64x8xf32>
    %84 = arith.select %81, %79, %83 : vector<64x8xi1>, vector<64x8xf32>
    %c2_60 = arith.constant 2 : index
    %c0_61 = arith.constant 0 : index
    %c0_62 = arith.constant 0 : index
    %85 = vector.load %arg4[%c2_60, %c0_61, %c0_62] : memref<4x2x32xf32, #tpu.memory_space<vmem>>, vector<1x2x32xf32>
    %86 = vector.shape_cast %85 : vector<1x2x32xf32> to vector<2x32xf32>
    %87 = vector.extract_strided_slice %84 {offsets = [0, 0], sizes = [32, 8], strides = [1, 1]} : vector<64x8xf32> to vector<32x8xf32>
    %cst_63 = arith.constant dense<0.000000e+00> : vector<2x8xf32>
    %88 = tpu.matmul %86, %87, %cst_63 {dimension_numbers = #tpu.dot_dimension_numbers<[1], [0], [0], [1], [0, 0, 1, 1], [], []>} : vector<2x32xf32>, vector<32x8xf32>, vector<2x8xf32> -> vector<2x8xf32>
    %c2_64 = arith.constant 2 : index
    %c0_65 = arith.constant 0 : index
    %c0_66 = arith.constant 0 : index
    %89 = vector.load %arg6[%c2_64, %c0_65, %c0_66] : memref<4x2x1xf32, #tpu.memory_space<vmem>>, vector<1x2x1xf32>
    %90 = vector.shape_cast %89 : vector<1x2x1xf32> to vector<2x1xf32>
    %91 = vector.broadcast %90 : vector<2x1xf32> to vector<2x8xf32>
    %92 = arith.addf %88, %91 : vector<2x8xf32>
    %c2_67 = arith.constant 2 : index
    %c0_68 = arith.constant 0 : index
    %c0_69 = arith.constant 0 : index
    %93 = vector.load %arg5[%c2_67, %c0_68, %c0_69] : memref<4x2x32xf32, #tpu.memory_space<vmem>>, vector<1x2x32xf32>
    %94 = vector.shape_cast %93 : vector<1x2x32xf32> to vector<2x32xf32>
    %95 = vector.extract_strided_slice %84 {offsets = [32, 0], sizes = [32, 8], strides = [1, 1]} : vector<64x8xf32> to vector<32x8xf32>
    %cst_70 = arith.constant dense<0.000000e+00> : vector<2x8xf32>
    %96 = tpu.matmul %94, %95, %cst_70 {dimension_numbers = #tpu.dot_dimension_numbers<[1], [0], [0], [1], [0, 0, 1, 1], [], []>} : vector<2x32xf32>, vector<32x8xf32>, vector<2x8xf32> -> vector<2x8xf32>
    %c2_71 = arith.constant 2 : index
    %c0_72 = arith.constant 0 : index
    %c0_73 = arith.constant 0 : index
    %97 = vector.load %arg7[%c2_71, %c0_72, %c0_73] : memref<4x2x1xf32, #tpu.memory_space<vmem>>, vector<1x2x1xf32>
    %98 = vector.shape_cast %97 : vector<1x2x1xf32> to vector<2x1xf32>
    %99 = vector.broadcast %98 : vector<2x1xf32> to vector<2x8xf32>
    %100 = arith.addf %96, %99 : vector<2x8xf32>
    %101 = math.exp %92 : vector<2x8xf32>
    %102 = arith.mulf %35, %101 : vector<2x8xf32>
    %103 = arith.addf %102, %100 : vector<2x8xf32>
    %cst_74 = arith.constant dense<0.000000e+00> : vector<8xf32>
    %104 = vector.multi_reduction <add>, %92, %cst_74 [0] : vector<2x8xf32> to vector<8xf32>
    %105 = vector.shape_cast %104 : vector<8xf32> to vector<1x8xf32>
    %c3 = arith.constant 3 : index
    %c0_75 = arith.constant 0 : index
    %c0_76 = arith.constant 0 : index
    %106 = vector.load %arg2[%c3, %c0_75, %c0_76] : memref<4x64x2xf32, #tpu.memory_space<vmem>>, vector<1x64x2xf32>
    %107 = vector.shape_cast %106 : vector<1x64x2xf32> to vector<64x2xf32>
    %cst_77 = arith.constant dense<0.000000e+00> : vector<64x8xf32>
    %108 = tpu.matmul %107, %103, %cst_77 {dimension_numbers = #tpu.dot_dimension_numbers<[1], [0], [0], [1], [0, 0, 1, 1], [], []>} : vector<64x2xf32>, vector<2x8xf32>, vector<64x8xf32> -> vector<64x8xf32>
    %c3_78 = arith.constant 3 : index
    %c0_79 = arith.constant 0 : index
    %c0_80 = arith.constant 0 : index
    %109 = vector.load %arg3[%c3_78, %c0_79, %c0_80] : memref<4x64x1xf32, #tpu.memory_space<vmem>>, vector<1x64x1xf32>
    %110 = vector.shape_cast %109 : vector<1x64x1xf32> to vector<64x1xf32>
    %111 = vector.broadcast %110 : vector<64x1xf32> to vector<64x8xf32>
    %112 = arith.addf %108, %111 : vector<64x8xf32>
    %cst_81 = arith.constant 0.000000e+00 : f32
    %113 = vector.broadcast %cst_81 : f32 to vector<64x8xf32>
    %114 = arith.cmpf ogt, %112, %113 : vector<64x8xf32>
    %cst_82 = arith.constant 0.00999999977 : f32
    %115 = vector.broadcast %cst_82 : f32 to vector<64x8xf32>
    %116 = arith.mulf %115, %112 : vector<64x8xf32>
    %117 = arith.select %114, %112, %116 : vector<64x8xi1>, vector<64x8xf32>
    %c3_83 = arith.constant 3 : index
    %c0_84 = arith.constant 0 : index
    %c0_85 = arith.constant 0 : index
    %118 = vector.load %arg4[%c3_83, %c0_84, %c0_85] : memref<4x2x32xf32, #tpu.memory_space<vmem>>, vector<1x2x32xf32>
    %119 = vector.shape_cast %118 : vector<1x2x32xf32> to vector<2x32xf32>
    %120 = vector.extract_strided_slice %117 {offsets = [0, 0], sizes = [32, 8], strides = [1, 1]} : vector<64x8xf32> to vector<32x8xf32>
    %cst_86 = arith.constant dense<0.000000e+00> : vector<2x8xf32>
    %121 = tpu.matmul %119, %120, %cst_86 {dimension_numbers = #tpu.dot_dimension_numbers<[1], [0], [0], [1], [0, 0, 1, 1], [], []>} : vector<2x32xf32>, vector<32x8xf32>, vector<2x8xf32> -> vector<2x8xf32>
    %c3_87 = arith.constant 3 : index
    %c0_88 = arith.constant 0 : index
    %c0_89 = arith.constant 0 : index
    %122 = vector.load %arg6[%c3_87, %c0_88, %c0_89] : memref<4x2x1xf32, #tpu.memory_space<vmem>>, vector<1x2x1xf32>
    %123 = vector.shape_cast %122 : vector<1x2x1xf32> to vector<2x1xf32>
    %124 = vector.broadcast %123 : vector<2x1xf32> to vector<2x8xf32>
    %125 = arith.addf %121, %124 : vector<2x8xf32>
    %c3_90 = arith.constant 3 : index
    %c0_91 = arith.constant 0 : index
    %c0_92 = arith.constant 0 : index
    %126 = vector.load %arg5[%c3_90, %c0_91, %c0_92] : memref<4x2x32xf32, #tpu.memory_space<vmem>>, vector<1x2x32xf32>
    %127 = vector.shape_cast %126 : vector<1x2x32xf32> to vector<2x32xf32>
    %128 = vector.extract_strided_slice %117 {offsets = [32, 0], sizes = [32, 8], strides = [1, 1]} : vector<64x8xf32> to vector<32x8xf32>
    %cst_93 = arith.constant dense<0.000000e+00> : vector<2x8xf32>
    %129 = tpu.matmul %127, %128, %cst_93 {dimension_numbers = #tpu.dot_dimension_numbers<[1], [0], [0], [1], [0, 0, 1, 1], [], []>} : vector<2x32xf32>, vector<32x8xf32>, vector<2x8xf32> -> vector<2x8xf32>
    %c3_94 = arith.constant 3 : index
    %c0_95 = arith.constant 0 : index
    %c0_96 = arith.constant 0 : index
    %130 = vector.load %arg7[%c3_94, %c0_95, %c0_96] : memref<4x2x1xf32, #tpu.memory_space<vmem>>, vector<1x2x1xf32>
    %131 = vector.shape_cast %130 : vector<1x2x1xf32> to vector<2x1xf32>
    %132 = vector.broadcast %131 : vector<2x1xf32> to vector<2x8xf32>
    %133 = arith.addf %129, %132 : vector<2x8xf32>
    %134 = math.exp %125 : vector<2x8xf32>
    %135 = arith.mulf %68, %134 : vector<2x8xf32>
    %136 = arith.addf %135, %133 : vector<2x8xf32>
    %cst_97 = arith.constant dense<0.000000e+00> : vector<8xf32>
    %137 = vector.multi_reduction <add>, %125, %cst_97 [0] : vector<2x8xf32> to vector<8xf32>
    %138 = vector.shape_cast %137 : vector<8xf32> to vector<1x8xf32>
    %139 = arith.addf %72, %105 : vector<1x8xf32>
    %140 = arith.addf %139, %138 : vector<1x8xf32>
    %c0_98 = arith.constant 0 : index
    %c0_99 = arith.constant 0 : index
    %c0_100 = arith.constant 0 : index
    %141 = vector.load %arg8[%c0_98, %c0_99, %c0_100] : memref<2x2x8xf32, #tpu.memory_space<vmem>>, vector<1x2x8xf32>
    %142 = vector.shape_cast %141 : vector<1x2x8xf32> to vector<2x8xf32>
    %143 = vector.shape_cast %136 : vector<2x8xf32> to vector<1x2x8xf32>
    tpu.vector_store %arg8[%c0_98, %c0_99, %c0_100], %143 {strides = array<i32>} : memref<2x2x8xf32, #tpu.memory_space<vmem>>, vector<1x2x8xf32>,
    %c1_101 = arith.constant 1 : index
    %c0_102 = arith.constant 0 : index
    %c0_103 = arith.constant 0 : index
    %144 = vector.load %arg8[%c1_101, %c0_102, %c0_103] : memref<2x2x8xf32, #tpu.memory_space<vmem>>, vector<1x2x8xf32>
    %145 = vector.shape_cast %144 : vector<1x2x8xf32> to vector<2x8xf32>
    %146 = vector.shape_cast %103 : vector<2x8xf32> to vector<1x2x8xf32>
    tpu.vector_store %arg8[%c1_101, %c0_102, %c0_103], %146 {strides = array<i32>} : memref<2x2x8xf32, #tpu.memory_space<vmem>>, vector<1x2x8xf32>,
    %c0_104 = arith.constant 0 : index
    %c0_105 = arith.constant 0 : index
    %147 = vector.load %arg10[%c0_104, %c0_105] : memref<1x8xf32, #tpu.memory_space<vmem>>, vector<1x8xf32>
    tpu.vector_store %arg10[%c0_104, %c0_105], %140 {strides = array<i32>} : memref<1x8xf32, #tpu.memory_space<vmem>>, vector<1x8xf32>,
    %148 = arith.mulf %136, %136 : vector<2x8xf32>
    %cst_106 = arith.constant dense<0.000000e+00> : vector<8xf32>
    %149 = vector.multi_reduction <add>, %148, %cst_106 [0] : vector<2x8xf32> to vector<8xf32>
    %150 = vector.shape_cast %149 : vector<8xf32> to vector<1x8xf32>
    %151 = arith.mulf %103, %103 : vector<2x8xf32>
    %cst_107 = arith.constant dense<0.000000e+00> : vector<8xf32>
    %152 = vector.multi_reduction <add>, %151, %cst_107 [0] : vector<2x8xf32> to vector<8xf32>
    %153 = vector.shape_cast %152 : vector<8xf32> to vector<1x8xf32>
    %154 = arith.addf %150, %153 : vector<1x8xf32>
    %cst_108 = arith.constant -5.000000e-01 : f32
    %155 = vector.broadcast %cst_108 : f32 to vector<1x8xf32>
    %156 = arith.mulf %155, %154 : vector<1x8xf32>
    %cst_109 = arith.constant 3.67575407 : f32
    %157 = vector.broadcast %cst_109 : f32 to vector<1x8xf32>
    %158 = arith.subf %156, %157 : vector<1x8xf32>
    %c0_110 = arith.constant 0 : index
    %c0_111 = arith.constant 0 : index
    %159 = vector.load %arg9[%c0_110, %c0_111] : memref<1x8xf32, #tpu.memory_space<vmem>>, vector<1x8xf32>
    tpu.vector_store %arg9[%c0_110, %c0_111], %158 {strides = array<i32>} : memref<1x8xf32, #tpu.memory_space<vmem>>, vector<1x8xf32>,
    return
  }
  func.func @transform_0(%arg0: i32) -> (i32, i32, i32) {
    %c0_i32 = arith.constant 0 : i32
    %c0_i32_0 = arith.constant 0 : i32
    %c0_i32_1 = arith.constant 0 : i32
    return %c0_i32, %c0_i32_0, %arg0 : i32, i32, i32
  }
  func.func @transform_1(%arg0: i32) -> (i32, i32, i32) {
    %c0_i32 = arith.constant 0 : i32
    %c0_i32_0 = arith.constant 0 : i32
    %c0_i32_1 = arith.constant 0 : i32
    %c0_i32_2 = arith.constant 0 : i32
    return %c0_i32, %c0_i32_0, %c0_i32_1 : i32, i32, i32
  }
  func.func @transform_2(%arg0: i32) -> (i32, i32, i32) {
    %c0_i32 = arith.constant 0 : i32
    %c0_i32_0 = arith.constant 0 : i32
    %c0_i32_1 = arith.constant 0 : i32
    %c0_i32_2 = arith.constant 0 : i32
    return %c0_i32, %c0_i32_0, %c0_i32_1 : i32, i32, i32
  }
  func.func @transform_3(%arg0: i32) -> (i32, i32, i32) {
    %c0_i32 = arith.constant 0 : i32
    %c0_i32_0 = arith.constant 0 : i32
    %c0_i32_1 = arith.constant 0 : i32
    %c0_i32_2 = arith.constant 0 : i32
    return %c0_i32, %c0_i32_0, %c0_i32_1 : i32, i32, i32
  }
  func.func @transform_4(%arg0: i32) -> (i32, i32, i32) {
    %c0_i32 = arith.constant 0 : i32
    %c0_i32_0 = arith.constant 0 : i32
    %c0_i32_1 = arith.constant 0 : i32
    %c0_i32_2 = arith.constant 0 : i32
    return %c0_i32, %c0_i32_0, %c0_i32_1 : i32, i32, i32
  }
  func.func @transform_5(%arg0: i32) -> (i32, i32, i32) {
    %c0_i32 = arith.constant 0 : i32
    %c0_i32_0 = arith.constant 0 : i32
    %c0_i32_1 = arith.constant 0 : i32
    %c0_i32_2 = arith.constant 0 : i32
    return %c0_i32, %c0_i32_0, %c0_i32_1 : i32, i32, i32
  }
  func.func @transform_6(%arg0: i32) -> (i32, i32, i32) {
    %c0_i32 = arith.constant 0 : i32
    %c0_i32_0 = arith.constant 0 : i32
    %c0_i32_1 = arith.constant 0 : i32
    %c0_i32_2 = arith.constant 0 : i32
    return %c0_i32, %c0_i32_0, %c0_i32_1 : i32, i32, i32
  }
  func.func @transform_7(%arg0: i32) -> (i32, i32, i32) {
    %c0_i32 = arith.constant 0 : i32
    %c0_i32_0 = arith.constant 0 : i32
    %c0_i32_1 = arith.constant 0 : i32
    return %c0_i32, %c0_i32_0, %arg0 : i32, i32, i32
  }
  func.func @transform_8(%arg0: i32) -> (i32, i32) {
    %c0_i32 = arith.constant 0 : i32
    %c0_i32_0 = arith.constant 0 : i32
    return %c0_i32, %arg0 : i32, i32
  }
  func.func @transform_9(%arg0: i32) -> (i32, i32) {
    %c0_i32 = arith.constant 0 : i32
    %c0_i32_0 = arith.constant 0 : i32
    return %c0_i32, %arg0 : i32, i32
  }
}

</mosaic_0001>

<bundles_post_ra>
// kernel: tpu_custom_call.1
= control target key start
LH: loop header
LB: loop body
LE: loop exit
PB: predicated region body
PF: predicated region fallthrough
CT: control target
= control target key end

     0   :  { %15 = vsyncpa [#allocation3], 0  ;;  %vm115_vm0 = vcmask 1041408   ;;  %v2068_v3 = vmov 0   ;;  %vm90_vm1 = vcmask 15360   ;;  %s2519_s0 = inlined_call_operand.vmem [shape: f32[2,2,8], index: 0, kind: input, shape index: {}]   ;;  %s2520_s1 = inlined_call_operand.vmem [shape: f32[4,64,2], index: 1, kind: input, shape index: {}]   ;;  %s2521_s2 = inlined_call_operand.vmem [shape: f32[4,64,1], index: 2, kind: input, shape index: {}]   ;;  %s2522_s3 = inlined_call_operand.vmem [shape: f32[4,2,32], index: 3, kind: input, shape index: {}]   ;;  %s2523_s4 = inlined_call_operand.vmem [shape: f32[4,2,32], index: 4, kind: input, shape index: {}]   ;;  %s2524_s5 = inlined_call_operand.vmem [shape: f32[4,2,1], index: 5, kind: input, shape index: {}]   ;;  %s2525_s6 = inlined_call_operand.vmem [shape: f32[4,2,1], index: 6, kind: input, shape index: {}]   ;;  %s2526_s7 = inlined_call_operand.hbm [shape: f32[2,2,8], index: 7, kind: output, shape index: {0}]   ;;  %s2527_s8 = inlined_call_operand.hbm [shape: f32[1,8], index: 8, kind: output, shape index: {1}]   ;;  %s2528_s9 = inlined_call_operand.hbm [shape: f32[1,8], index: 9, kind: output, shape index: {2}]  }
   0x1   :  { %v2129_v0 = vld [vmem:[%s2519_s0] sm:$0x3]  ;;  %v45_v1 = vld [vmem:[%s2521_s2 + $0x18] sm:$0xff]  ;;  %v43_v2 = vld [vmem:[%s2521_s2 + $0x8] sm:$0xff]  ;;  %1995 = vset.pattern.permute.xlu1 %v2068_v3  ;;  %1994 = vset.pattern.permute.xlu0 %v2068_v3 }
   0x2   :  { %v34_v4 = vld [vmem:[%s2520_s1] sm:$0xff]  ;;  %1842 = vmatprep.subr.msk.mxu0 %vm115_vm0, %v2129_v0  ;;  %67 = vperm.xlu0 %1994, %v45_v1   ;;  %v35_v5 = vld [vmem:[%s2520_s1 + $0x8] sm:$0xff]  ;;  %v44_v6 = vld [vmem:[%s2521_s2 + $0x10] sm:$0xff] }
   0x3   :  { %57 = vperm.xlu1 %1995, %v43_v2   ;;  %1843 = vmatpush3.msk.msra.mxu0 %vm115_vm0, %v2129_v0  ;;  %v36_v7 = vld [vmem:[%s2520_s1 + $0x10] sm:$0xff]  ;;  %v42_v8 = vld [vmem:[%s2521_s2] sm:$0xff]  ;;  %v37_v9 = vld [vmem:[%s2520_s1 + $0x18] sm:$0xff] }
   0x4   :  { %1844 = vmatprep.mubr.msk.f32.mxu0 %vm90_vm1, %v34_v4  ;;  %v49_v10 = vld [vmem:[%s2521_s2 + $0x38] sm:$0xff]  ;;  %v38_v11 = vld [vmem:[%s2520_s1 + $0x20] sm:$0xff]  ;;  %v48_v12 = vld [vmem:[%s2521_s2 + $0x30] sm:$0xff] }
   0x5   :  { %1845 = vmatmul.mubr.msk.f32.vlgmr.msra.gmra.mxu0 %vm90_vm1, %v35_v5  ;;  %v39_v13 = vld [vmem:[%s2520_s1 + $0x28] sm:$0xff]  ;;  %v40_v15 = vld [vmem:[%s2520_s1 + $0x30] sm:$0xff]  ;;  %v46_v16 = vld [vmem:[%s2521_s2 + $0x20] sm:$0xff] }
   0x6   :  { %62 = vperm.xlu0 %1994, %v44_v6   ;;  %1847 = vmatprep.mubr.msk.f32.mxu0 %vm90_vm1, %v36_v7  ;;  %v47_v14 = vld [vmem:[%s2521_s2 + $0x28] sm:$0xff]  ;;  %v41_v17 = vld [vmem:[%s2520_s1 + $0x38] sm:$0xff]  ;;  %v249_v18 = vld [vmem:[%s2524_s5] sm:$0x3] }
   0x7   :  { %52 = vperm.xlu1 %1995, %v42_v8   ;;  %v330_v19 = vld [vmem:[%s2525_s6] sm:$0x3] }
   0x9   :  { %1848 = vmatmul.mubr.msk.f32.gmra.mxu0 %vm90_vm1, %v37_v9 }
   0xa   :  { %87 = vperm.xlu0 %1994, %v49_v10   ;;  %1850 = vmatprep.mubr.msk.f32.mxu0 %vm90_vm1, %v38_v11 }
   0xb   :  { %82 = vperm.xlu1 %1995, %v48_v12  }
   0xd   :  { %1851 = vmatmul.mubr.msk.f32.gmra.mxu0 %vm90_vm1, %v39_v13 }
   0xe   :  { %77 = vperm.xlu0 %1994, %v47_v14   ;;  %1853 = vmatprep.mubr.msk.f32.mxu0 %vm90_vm1, %v40_v15 }
   0xf   :  { %72 = vperm.xlu1 %1995, %v46_v16  }
  0x10   :  { %16 = vsyncpa [#allocation5], 0  ;;  %v1683_v20 = vld [vmem:[%s2521_s2 + $0x58] sm:$0xff]  ;;  %v1682_v21 = vld [vmem:[%s2521_s2 + $0x50] sm:$0xff]  ;;  %v2069_v50 = vmov 0.0   ;;  %vm2070_vm2 = vmmov 0  }
  0x11   :  { %1854 = vmatmul.mubr.msk.f32.gmra.mxu0 %vm90_vm1, %v41_v17  ;;  %v1681_v22 = vld [vmem:[%s2521_s2 + $0x48] sm:$0xff]  ;;  %v1680_v23 = vld [vmem:[%s2521_s2 + $0x40] sm:$0xff]  ;;  %v1687_v24 = vld [vmem:[%s2521_s2 + $0x78] sm:$0xff]  ;;  %1856 = vmatprep.subr.mxu1 %v2069_v50  ;;  %vm255_vm7 = vcmask 261120  }
  0x12   :  { %252 = vperm.xlu0 %1994, %v249_v18   ;;  %v1686_v25 = vld [vmem:[%s2521_s2 + $0x70] sm:$0xff]  ;;  %v1685_v26 = vld [vmem:[%s2521_s2 + $0x68] sm:$0xff]  ;;  %v1684_v27 = vld [vmem:[%s2521_s2 + $0x60] sm:$0xff]  ;;  %1864 = vmatprep.mubr.msk.f32.mxu1 %vm2070_vm2, %v2069_v50 }
  0x13   :  { %333 = vperm.xlu1 %1995, %v330_v19   ;;  %v1698_v28 = vld [vmem:[%s2524_s5 + $0x2] sm:$0x3]  ;;  %v1714_v30 = vld [vmem:[%s2521_s2 + $0x98] sm:$0xff]  ;;  %v1713_v31 = vld [vmem:[%s2521_s2 + $0x90] sm:$0xff] }
  0x14   :  { %v1701_v29 = vld [vmem:[%s2525_s6 + $0x2] sm:$0x3]  ;;  %v1712_v32 = vld [vmem:[%s2521_s2 + $0x88] sm:$0xff]  ;;  %v1718_v34 = vld [vmem:[%s2521_s2 + $0xb8] sm:$0xff] }
  0x15   :  { %v1711_v33 = vld [vmem:[%s2521_s2 + $0x80] sm:$0xff]  ;;  %v1717_v35 = vld [vmem:[%s2521_s2 + $0xb0] sm:$0xff]  ;;  %v1716_v36 = vld [vmem:[%s2521_s2 + $0xa8] sm:$0xff] }
  0x16   :  { %456 = vperm.xlu0 %1994, %v1683_v20   ;;  %v1715_v37 = vld [vmem:[%s2521_s2 + $0xa0] sm:$0xff]  ;;  %v1745_v40 = vld [vmem:[%s2521_s2 + $0xd8] sm:$0xff]  ;;  %v1744_v41 = vld [vmem:[%s2521_s2 + $0xd0] sm:$0xff] }
  0x17   :  { %451 = vperm.xlu1 %1995, %v1682_v21   ;;  %v1729_v38 = vld [vmem:[%s2524_s5 + $0x4] sm:$0x3]  ;;  %v1743_v42 = vld [vmem:[%s2521_s2 + $0xc8] sm:$0xff]  ;;  %v1749_v44 = vld [vmem:[%s2521_s2 + $0xf8] sm:$0xff] }
  0x18   :  { %v1732_v39 = vld [vmem:[%s2525_s6 + $0x4] sm:$0x3]  ;;  %v1748_v45 = vld [vmem:[%s2521_s2 + $0xf0] sm:$0xff]  ;;  %v1747_v46 = vld [vmem:[%s2521_s2 + $0xe8] sm:$0xff] }
  0x19   :  { %v1742_v43 = vld [vmem:[%s2521_s2 + $0xc0] sm:$0xff] }
  0x1a   :  { %446 = vperm.xlu0 %1994, %v1681_v22   ;;  %v1746_v47 = vld [vmem:[%s2521_s2 + $0xe0] sm:$0xff] }
  0x1b   :  { %441 = vperm.xlu1 %1995, %v1680_v23   ;;  %v1760_v48 = vld [vmem:[%s2524_s5 + $0x6] sm:$0x3]  ;;  %v248_v18 = vld [vmem:[%s2522_s3] sm:$0x3] }
  0x1c   :  { %v1763_v49 = vld [vmem:[%s2525_s6 + $0x6] sm:$0x3] }
  0x1e   :  { %476 = vperm.xlu0 %1994, %v1687_v24  }
  0x1f   :  { %471 = vperm.xlu1 %1995, %v1686_v25  }
  0x22   :  { %466 = vperm.xlu0 %1994, %v1685_v26  }
  0x23   :  { %461 = vperm.xlu1 %1995, %v1684_v27  }
  0x26   :  { %641 = vperm.xlu0 %1994, %v1698_v28   ;;  %v329_v28 = vld [vmem:[%s2523_s4] sm:$0x3] }
  0x27   :  { %723 = vperm.xlu1 %1995, %v1701_v29  }
  0x2a   :  { %847 = vperm.xlu0 %1994, %v1714_v30   ;;  %v1672_v30 = vld [vmem:[%s2520_s1 + $0x40] sm:$0xff] }
  0x2b   :  { %842 = vperm.xlu1 %1995, %v1713_v31   ;;  %1880 = vmatprep.mubr.msk.f32.mxu0 %vm90_vm1, %v1672_v30 }
  0x2e   :  { %837 = vperm.xlu0 %1994, %v1712_v32  }
  0x2f   :  { %832 = vperm.xlu1 %1995, %v1711_v33  }
  0x32   :  { %867 = vperm.xlu0 %1994, %v1718_v34  }
  0x33   :  { %862 = vperm.xlu1 %1995, %v1717_v35  }
  0x36   :  { %857 = vperm.xlu0 %1994, %v1716_v36  }
  0x37   :  { %852 = vperm.xlu1 %1995, %v1715_v37  }
  0x3a   :  { %1032 = vperm.xlu0 %1994, %v1729_v38   ;;  %v1660_v38 = vld [vmem:[%s2519_s0 + $0x2] sm:$0x3] }
  0x3b   :  { %1114 = vperm.xlu1 %1995, %v1732_v39  }
  0x3e   :  { %1236 = vperm.xlu0 %1994, %v1745_v40  }
  0x3f   :  { %1231 = vperm.xlu1 %1995, %v1744_v41  }
  0x42   :  { %1226 = vperm.xlu0 %1994, %v1743_v42  }
  0x43   :  { %1221 = vperm.xlu1 %1995, %v1742_v43  }
  0x46   :  { %1256 = vperm.xlu0 %1994, %v1749_v44   ;;  %v1673_v44 = vld [vmem:[%s2520_s1 + $0x48] sm:$0xff] }
  0x47   :  { %1251 = vperm.xlu1 %1995, %v1748_v45   ;;  %v1674_v45 = vld [vmem:[%s2520_s1 + $0x50] sm:$0xff] }
  0x4a   :  { %1246 = vperm.xlu0 %1994, %v1747_v46   ;;  %v1675_v46 = vld [vmem:[%s2520_s1 + $0x58] sm:$0xff] }
  0x4b   :  { %1241 = vperm.xlu1 %1995, %v1746_v47   ;;  %v1676_v47 = vld [vmem:[%s2520_s1 + $0x60] sm:$0xff] }
  0x4e   :  { %1421 = vperm.xlu0 %1994, %v1760_v48   ;;  %v1677_v48 = vld [vmem:[%s2520_s1 + $0x68] sm:$0xff] }
  0x4f   :  { %1503 = vperm.xlu1 %1995, %v1763_v49   ;;  %v1678_v49 = vld [vmem:[%s2520_s1 + $0x70] sm:$0xff] }
  0x7d   :  { %v68_v51 = vpop.permute.xlu0 %67 }
  0x7e   :  { %v58_v52 = vpop.permute.xlu1 %57 }
  0x81   :  { %v63_v53 = vpop.permute.xlu0 %62 }
  0x82   :  { %v53_v55 = vpop.permute.xlu1 %52 }
  0x85   :  { %v88_v60 = vpop.permute.xlu0 %87 }
  0x86   :  { %v83_v2 = vpop.permute.xlu1 %82 }
  0x89   :  { %v78_v10 = vpop.permute.xlu0 %77 }
  0x8a   :  { %v73_v15 = vpop.permute.xlu1 %72 }
  0x8d   :  { %v253_v31 = vpop.permute.xlu0 %252 }
  0x8e   :  { %v334_v40 = vpop.permute.xlu1 %333 }
  0xc5   :  { %v1846_v54 = vpop.f32.mrf.mxu0 }
  0xc6   :  { %v191_v58 = vadd.f32 %v1846_v54, %v58_v52  ;;  %v457_v52 = vpop.permute.xlu0 %456 }
  0xc7   :  { %v185_v56 = vpop.f32.mrf.mxu0 }
  0xc8   :  { %v186_v61 = vadd.f32 %v185_v56, %v53_v55  ;;  %v233_v4 = vmul.f32 0.01, %v191_v58  ;;  %vm225_vm5 = vcmp.gt.f32.partialorder %v191_v58, 0.0 }
  0xc9   :  { %v1849_v57 = vpop.f32.mrf.mxu0 }
  0xca   :  { %v201_v59 = vadd.f32 %v1849_v57, %v68_v51  ;;  %v232_v7 = vmul.f32 0.01, %v186_v61  ;;  %vm224_vm6 = vcmp.gt.f32.partialorder %v186_v61, 0.0  ;;  %v241_v14 = vsel %vm225_vm5, %v191_v58, %v233_v4  ;;  %v1679_v51 = vld [vmem:[%s2520_s1 + $0x78] sm:$0xff]  ;;  %v447_v54 = vpop.permute.xlu0 %446 }
  0xcb   :  { %v195_v62 = vpop.f32.mrf.mxu0 }
  0xcc   :  { %v196_v63 = vadd.f32 %v195_v62, %v63_v53  ;;  %vm227_vm3 = vcmp.gt.f32.partialorder %v201_v59, 0.0  ;;  %v235_v1 = vmul.f32 0.01, %v201_v59  ;;  %v240_v17 = vsel %vm224_vm6, %v186_v61, %v232_v7  ;;  %v452_v53 = vpop.permute.xlu1 %451 }
  0xcd   :  { %v1852_v3 = vpop.f32.mrf.mxu0 }
  0xce   :  { %v234_v5 = vmul.f32 0.01, %v196_v63  ;;  %v243_v6 = vsel %vm227_vm3, %v201_v59, %v235_v1  ;;  %vm226_vm4 = vcmp.gt.f32.partialorder %v196_v63, 0.0  ;;  %v211_v12 = vadd.f32 %v1852_v3, %v78_v10  ;;  %v477_v61 = vpop.permute.xlu0 %476 }
  0xcf   :  { %v205_v8 = vpop.f32.mrf.mxu0  ;;  %1857 = vmatpush3.msra.mxu1 %v243_v6 }
  0xd0   :  { %1858 = vmatprep.subr.mxu1 %v2069_v50  ;;  %v242_v9 = vsel %vm226_vm4, %v196_v63, %v234_v5  ;;  %v206_v19 = vadd.f32 %v205_v8, %v73_v15  ;;  %v237_v22 = vmul.f32 0.01, %v211_v12  ;;  %vm229_vm10 = vcmp.gt.f32.partialorder %v211_v12, 0.0  ;;  %v442_v56 = vpop.permute.xlu1 %441 }
  0xd1   :  { %v1855_v11 = vpop.f32.mrf.mxu0  ;;  %1859 = vmatpush3.msra.mxu1 %v242_v9 }
  0xd2   :  { %v221_v13 = vadd.f32 %v1855_v11, %v88_v60  ;;  %1860 = vmatprep.subr.mxu1 %v2069_v50  ;;  %v236_v25 = vmul.f32 0.01, %v206_v19  ;;  %vm228_vm11 = vcmp.gt.f32.partialorder %v206_v19, 0.0  ;;  %v245_v27 = vsel %vm229_vm10, %v211_v12, %v237_v22  ;;  %v467_v11 = vpop.permute.xlu0 %466 }
  0xd3   :  { %v215_v16 = vpop.f32.mrf.mxu0  ;;  %1861 = vmatpush3.msra.mxu1 %v241_v14 }
  0xd4   :  { %vm231_vm8 = vcmp.gt.f32.partialorder %v221_v13, 0.0  ;;  %v239_v20 = vmul.f32 0.01, %v221_v13  ;;  %v216_v21 = vadd.f32 %v215_v16, %v83_v2  ;;  %1862 = vmatprep.subr.mxu1 %v2069_v50  ;;  %v244_v29 = vsel %vm228_vm11, %v206_v19, %v236_v25  ;;  %v472_v3 = vpop.permute.xlu1 %471  ;;  %v1697_v19 = vld [vmem:[%s2522_s3 + $0x2] sm:$0x3] }
  0xd5   :  { %1863 = vmatpush3.msra.mxu1 %v240_v17 }
  0xd6   :  { %vm230_vm9 = vcmp.gt.f32.partialorder %v216_v21, 0.0  ;;  %v238_v23 = vmul.f32 0.01, %v216_v21  ;;  %1865 = vmatmul.mubr.msk.f32.vlgmr.msra.gmra.mxu1 %vm255_vm7, %v248_v18  ;;  %1867 = vmatprep.subr.mxu1 %v2069_v50  ;;  %v247_v24 = vsel %vm231_vm8, %v221_v13, %v239_v20  ;;  %vm413_vm8 = vcmask 58368  }
  0xd7   :  { %1868 = vmatpush3.msra.mxu1 %v247_v24  ;;  %1875 = vmatprep.mubr.msk.f32.mxu1 %vm2070_vm2, %v2069_v50 }
  0xd8   :  { %1869 = vmatprep.subr.mxu1 %v2069_v50  ;;  %v246_v26 = vsel %vm230_vm9, %v216_v21, %v238_v23  ;;  %v462_v16 = vpop.permute.xlu1 %461 }
  0xd9   :  { %1870 = vmatpush3.msra.mxu1 %v246_v26 }
  0xda   :  { %1871 = vmatprep.subr.mxu1 %v2069_v50 }
  0xdb   :  { %1872 = vmatpush3.msra.mxu1 %v245_v27 }
  0xdc   :  { %1873 = vmatprep.subr.mxu1 %v2069_v50 }
  0xdd   :  { %1874 = vmatpush3.msra.mxu1 %v244_v29  ;;  %v1700_v29 = vld [vmem:[%s2523_s4 + $0x2] sm:$0x3] }
  0xde   :  { %1876 = vmatmul.mubr.msk.f32.vlgmr.msra.gmra.mxu1 %vm255_vm7, %v329_v28  ;;  %1892 = vmatprep.subr.mxu1 %v2069_v50 }
  0xdf   :  { %1900 = vmatprep.mubr.msk.f32.mxu1 %vm2070_vm2, %v2069_v50 }
 0x196   :  { %v325_v32 = vpop.f32.mrf.mxu1 }
 0x197   :  { %v2314_v33 = vadd.f32 %v325_v32, %v253_v31  ;;  %v1703_v31 = vld [vmem:[%s2520_s1 + $0x80] sm:$0xff] }
 0x198   :  { %v1866_v34 = vpop.f32.mrf.mxu1 }
 0x199   :  { %v409_v35 = vmul.f32 1.442695, %v2314_v33  ;;  %v414_v32 = vsel %vm413_vm8, %v2314_v33, 0.0 }
 0x19a   :  { %v415_v34 = vrot.slane %v414_v32, 4 }
 0x19b   :  { %1996 = vpow2.f32 %v409_v35 }
 0x19c   :  { %v416_v35 = vadd.f32 %v415_v34, %v414_v32 }
 0x19e   :  { %v405_v36 = vpop.f32.mrf.mxu1 }
 0x19f   :  { %v406_v41 = vadd.f32 %v405_v36, %v334_v40  ;;  %v642_v36 = vpop.permute.xlu0 %641 }
 0x1a0   :  { %v1877_v37 = vpop.f32.mrf.mxu1 }
 0x1a8   :  { %v1997_v39 = vpop.eup %1996 }
 0x1a9   :  { %v411_v42 = vmul.f32 %v1997_v39, %v1660_v38  ;;  %v417_v39 = vrot.slane %v416_v35, 2 }
 0x1ab   :  { %v2320_v43 = vadd.f32 %v411_v42, %v406_v41 }
 0x1ad   :  { %1878 = vmatprep.subr.msk.mxu0 %vm115_vm0, %v2320_v43 }
 0x1ae   :  { %1879 = vmatpush3.msk.msra.mxu0 %vm115_vm0, %v2320_v43 }
 0x1af   :  { %1881 = vmatmul.mubr.msk.f32.vlgmr.msra.gmra.mxu0 %vm90_vm1, %v1673_v44 }
 0x1b0   :  { %1883 = vmatprep.mubr.msk.f32.mxu0 %vm90_vm1, %v1674_v45  ;;  %v418_v45 = vadd.f32 %v417_v39, %v416_v35  ;;  %v1728_v35 = vld [vmem:[%s2522_s3 + $0x4] sm:$0x3] }
 0x1b3   :  { %1884 = vmatmul.mubr.msk.f32.gmra.mxu0 %vm90_vm1, %v1675_v46 }
 0x1b4   :  { %1886 = vmatprep.mubr.msk.f32.mxu0 %vm90_vm1, %v1676_v47 }
 0x1b7   :  { %1887 = vmatmul.mubr.msk.f32.gmra.mxu0 %vm90_vm1, %v1677_v48 }
 0x1b8   :  { %1889 = vmatprep.mubr.msk.f32.mxu0 %vm90_vm1, %v1678_v49  ;;  %v419_v49 = vrot.slane %v418_v45, 1 }
 0x1bb   :  { %1890 = vmatmul.mubr.msk.f32.gmra.mxu0 %vm90_vm1, %v1679_v51 }
 0x1bc   :  { %1916 = vmatprep.mubr.msk.f32.mxu0 %vm90_vm1, %v1703_v31 }
 0x26f   :  { %v1882_v55 = vpop.f32.mrf.mxu0 }
 0x270   :  { %v578_v59 = vadd.f32 %v1882_v55, %v447_v54 }
 0x271   :  { %v572_v57 = vpop.f32.mrf.mxu0 }
 0x272   :  { %v573_v62 = vadd.f32 %v572_v57, %v442_v56  ;;  %v620_v5 = vmul.f32 0.01, %v578_v59  ;;  %vm612_vm14 = vcmp.gt.f32.partialorder %v578_v59, 0.0  ;;  %v724_v57 = vpop.permute.xlu1 %723 }
 0x273   :  { %v1885_v58 = vpop.f32.mrf.mxu0 }
 0x274   :  { %v588_v60 = vadd.f32 %v1885_v58, %v457_v52  ;;  %v619_v8 = vmul.f32 0.01, %v573_v62  ;;  %vm611_vm15 = vcmp.gt.f32.partialorder %v573_v62, 0.0  ;;  %v628_v15 = vsel %vm612_vm14, %v578_v59, %v620_v5 }
 0x275   :  { %v582_v63 = vpop.f32.mrf.mxu0 }
 0x276   :  { %vm614_vm12 = vcmp.gt.f32.partialorder %v588_v60, 0.0  ;;  %v622_v1 = vmul.f32 0.01, %v588_v60  ;;  %v583_v2 = vadd.f32 %v582_v63, %v452_v53  ;;  %v627_v18 = vsel %vm611_vm15, %v573_v62, %v619_v8  ;;  %v1705_v62 = vld [vmem:[%s2520_s1 + $0x90] sm:$0xff]  ;;  %v1707_v63 = vld [vmem:[%s2520_s1 + $0xa0] sm:$0xff]  ;;  %v843_v5 = vpop.permute.xlu1 %842 }
 0x277   :  { %v1888_v4 = vpop.f32.mrf.mxu0  ;;  %v420_v53 = vadd.f32 %v419_v49, %v418_v45 }
 0x278   :  { %vm613_vm13 = vcmp.gt.f32.partialorder %v583_v2, 0.0  ;;  %v621_v6 = vmul.f32 0.01, %v583_v2  ;;  %v630_v7 = vsel %vm614_vm12, %v588_v60, %v622_v1  ;;  %v598_v13 = vadd.f32 %v1888_v4, %v467_v11  ;;  %v1708_v1 = vld [vmem:[%s2520_s1 + $0xa8] sm:$0xff]  ;;  %v848_v4 = vpop.permute.xlu0 %847 }
 0x279   :  { %v592_v9 = vpop.f32.mrf.mxu0  ;;  %1893 = vmatpush3.msra.mxu1 %v630_v7 }
 0x27a   :  { %1894 = vmatprep.subr.mxu1 %v2069_v50  ;;  %v629_v10 = vsel %vm613_vm13, %v583_v2, %v621_v6  ;;  %v593_v20 = vadd.f32 %v592_v9, %v462_v16  ;;  %v624_v23 = vmul.f32 0.01, %v598_v13  ;;  %vm616_vm5 = vcmp.gt.f32.partialorder %v598_v13, 0.0  ;;  %v1709_v2 = vld [vmem:[%s2520_s1 + $0xb0] sm:$0xff]  ;;  %v833_v8 = vpop.permute.xlu1 %832 }
 0x27b   :  { %v1891_v12 = vpop.f32.mrf.mxu0  ;;  %1895 = vmatpush3.msra.mxu1 %v629_v10 }
 0x27c   :  { %v608_v14 = vadd.f32 %v1891_v12, %v477_v61  ;;  %1896 = vmatprep.subr.mxu1 %v2069_v50  ;;  %v623_v26 = vmul.f32 0.01, %v593_v20  ;;  %vm615_vm6 = vcmp.gt.f32.partialorder %v593_v20, 0.0  ;;  %v632_v28 = vsel %vm616_vm5, %v598_v13, %v624_v23  ;;  %v1704_v61 = vld [vmem:[%s2520_s1 + $0x88] sm:$0xff]  ;;  %v838_v6 = vpop.permute.xlu0 %837 }
 0x27d   :  { %v602_v17 = vpop.f32.mrf.mxu0  ;;  %1897 = vmatpush3.msra.mxu1 %v628_v15 }
 0x27e   :  { %vm618_vm3 = vcmp.gt.f32.partialorder %v608_v14, 0.0  ;;  %v626_v21 = vmul.f32 0.01, %v608_v14  ;;  %v603_v22 = vadd.f32 %v602_v17, %v472_v3  ;;  %1898 = vmatprep.subr.mxu1 %v2069_v50  ;;  %v631_v30 = vsel %vm615_vm6, %v593_v20, %v623_v26  ;;  %v1710_v3 = vld [vmem:[%s2520_s1 + $0xb8] sm:$0xff] }
 0x27f   :  { %1899 = vmatpush3.msra.mxu1 %v627_v18  ;;  %v863_v18 = vpop.permute.xlu1 %862 }
 0x280   :  { %vm617_vm4 = vcmp.gt.f32.partialorder %v603_v22, 0.0  ;;  %v625_v24 = vmul.f32 0.01, %v603_v22  ;;  %1901 = vmatmul.mubr.msk.f32.vlgmr.msra.gmra.mxu1 %vm255_vm7, %v1697_v19  ;;  %1903 = vmatprep.subr.mxu1 %v2069_v50  ;;  %v634_v25 = vsel %vm618_vm3, %v608_v14, %v626_v21  ;;  %v868_v13 = vpop.permute.xlu0 %867 }
 0x281   :  { %1904 = vmatpush3.msra.mxu1 %v634_v25  ;;  %1911 = vmatprep.mubr.msk.f32.mxu1 %vm2070_vm2, %v2069_v50 }
 0x282   :  { %1905 = vmatprep.subr.mxu1 %v2069_v50  ;;  %v633_v27 = vsel %vm617_vm4, %v603_v22, %v625_v24 }
 0x283   :  { %1906 = vmatpush3.msra.mxu1 %v633_v27  ;;  %v853_v31 = vpop.permute.xlu1 %852 }
 0x284   :  { %1907 = vmatprep.subr.mxu1 %v2069_v50  ;;  %v858_v26 = vpop.permute.xlu0 %857 }
 0x285   :  { %1908 = vmatpush3.msra.mxu1 %v632_v28 }
 0x286   :  { %1909 = vmatprep.subr.mxu1 %v2069_v50 }
 0x287   :  { %1910 = vmatpush3.msra.mxu1 %v631_v30 }
 0x288   :  { %1912 = vmatmul.mubr.msk.f32.vlgmr.msra.gmra.mxu1 %vm255_vm7, %v1700_v29  ;;  %1928 = vmatprep.subr.mxu1 %v2069_v50  ;;  %v1033_v49 = vpop.permute.xlu0 %1032 }
 0x289   :  { %1936 = vmatprep.mubr.msk.f32.mxu1 %vm2070_vm2, %v2069_v50 }
 0x340   :  { %v713_v37 = vpop.f32.mrf.mxu1 }
 0x341   :  { %v714_v38 = vadd.f32 %v713_v37, %v642_v36 }
 0x342   :  { %v1902_v40 = vpop.f32.mrf.mxu1 }
 0x343   :  { %v799_v41 = vmul.f32 1.442695, %v714_v38  ;;  %v803_v42 = vsel %vm413_vm8, %v714_v38, 0.0 }
 0x344   :  { %v804_v44 = vrot.slane %v803_v42, 4 }
 0x345   :  { %1998 = vpow2.f32 %v799_v41 }
 0x346   :  { %v805_v46 = vadd.f32 %v804_v44, %v803_v42 }
 0x348   :  { %v806_v47 = vrot.slane %v805_v46, 2  ;;  %v795_v48 = vpop.f32.mrf.mxu1 }
 0x349   :  { %v796_v58 = vadd.f32 %v795_v48, %v724_v57  ;;  %v1734_v48 = vld [vmem:[%s2520_s1 + $0xc0] sm:$0xff] }
 0x34a   :  { %v807_v51 = vadd.f32 %v806_v47, %v805_v46  ;;  %v1913_v52 = vpop.f32.mrf.mxu1  ;;  %v1731_v46 = vld [vmem:[%s2523_s4 + $0x4] sm:$0x3] }
 0x34c   :  { %v808_v33 = vrot.slane %v807_v51, 1 }
 0x34e   :  { %v809_v54 = vadd.f32 %v808_v33, %v807_v51 }
 0x350   :  { %v2381_v55 = vadd.f32 %v809_v54, %v420_v53 }
 0x352   :  { %v1999_v56 = vpop.eup %1998 }
 0x353   :  { %v801_v59 = vmul.f32 %v1999_v56, %v2129_v0  ;;  %v1706_v0 = vld [vmem:[%s2520_s1 + $0x98] sm:$0xff] }
 0x355   :  { %v2384_v60 = vadd.f32 %v801_v59, %v796_v58 }
 0x357   :  { %1914 = vmatprep.subr.msk.mxu0 %vm115_vm0, %v2384_v60 }
 0x358   :  { %1915 = vmatpush3.msk.msra.mxu0 %vm115_vm0, %v2384_v60 }
 0x359   :  { %1917 = vmatmul.mubr.msk.f32.vlgmr.msra.gmra.mxu0 %vm90_vm1, %v1704_v61 }
 0x35a   :  { %1919 = vmatprep.mubr.msk.f32.mxu0 %vm90_vm1, %v1705_v62 }
 0x35d   :  { %1920 = vmatmul.mubr.msk.f32.gmra.mxu0 %vm90_vm1, %v1706_v0 }
 0x35e   :  { %1922 = vmatprep.mubr.msk.f32.mxu0 %vm90_vm1, %v1707_v63 }
 0x361   :  { %1923 = vmatmul.mubr.msk.f32.gmra.mxu0 %vm90_vm1, %v1708_v1 }
 0x362   :  { %1925 = vmatprep.mubr.msk.f32.mxu0 %vm90_vm1, %v1709_v2 }
 0x365   :  { %1926 = vmatmul.mubr.msk.f32.gmra.mxu0 %vm90_vm1, %v1710_v3  ;;  %v1115_v3 = vpop.permute.xlu1 %1114 }
 0x366   :  { %1952 = vmatprep.mubr.msk.f32.mxu0 %vm90_vm1, %v1734_v48 }
 0x419   :  { %v1918_v7 = vpop.f32.mrf.mxu0 }
 0x41a   :  { %v969_v11 = vadd.f32 %v1918_v7, %v838_v6  ;;  %v1735_v7 = vld [vmem:[%s2520_s1 + $0xc8] sm:$0xff] }
 0x41b   :  { %v963_v9 = vpop.f32.mrf.mxu0 }
 0x41c   :  { %v964_v14 = vadd.f32 %v963_v9, %v833_v8  ;;  %v1011_v20 = vmul.f32 0.01, %v969_v11  ;;  %vm1003_vm11 = vcmp.gt.f32.partialorder %v969_v11, 0.0  ;;  %v1738_v8 = vld [vmem:[%s2520_s1 + $0xe0] sm:$0xff]  ;;  %v1739_v9 = vld [vmem:[%s2520_s1 + $0xe8] sm:$0xff] }
 0x41d   :  { %v1921_v10 = vpop.f32.mrf.mxu0 }
 0x41e   :  { %v979_v12 = vadd.f32 %v1921_v10, %v848_v4  ;;  %v1010_v23 = vmul.f32 0.01, %v964_v14  ;;  %vm1002_vm12 = vcmp.gt.f32.partialorder %v964_v14, 0.0  ;;  %v1019_v30 = vsel %vm1003_vm11, %v969_v11, %v1011_v20  ;;  %v1740_v10 = vld [vmem:[%s2520_s1 + $0xf0] sm:$0xff]  ;;  %v1741_v11 = vld [vmem:[%s2520_s1 + $0xf8] sm:$0xff] }
 0x41f   :  { %v973_v15 = vpop.f32.mrf.mxu0 }
 0x420   :  { %vm1005_vm9 = vcmp.gt.f32.partialorder %v979_v12, 0.0  ;;  %v1013_v16 = vmul.f32 0.01, %v979_v12  ;;  %v974_v17 = vadd.f32 %v973_v15, %v843_v5  ;;  %v1018_v34 = vsel %vm1002_vm12, %v964_v14, %v1010_v23 }
 0x421   :  { %v1924_v19 = vpop.f32.mrf.mxu0 }
 0x422   :  { %vm1004_vm10 = vcmp.gt.f32.partialorder %v974_v17, 0.0  ;;  %v1012_v21 = vmul.f32 0.01, %v974_v17  ;;  %v1021_v22 = vsel %vm1005_vm9, %v979_v12, %v1013_v16  ;;  %v989_v28 = vadd.f32 %v1924_v19, %v858_v26  ;;  %v1237_v12 = vpop.permute.xlu0 %1236 }
 0x423   :  { %v983_v24 = vpop.f32.mrf.mxu0  ;;  %1929 = vmatpush3.msra.mxu1 %v1021_v22 }
 0x424   :  { %1930 = vmatprep.subr.mxu1 %v2069_v50  ;;  %v1020_v25 = vsel %vm1004_vm10, %v974_v17, %v1012_v21  ;;  %v984_v36 = vadd.f32 %v983_v24, %v853_v31  ;;  %v1015_v39 = vmul.f32 0.01, %v989_v28  ;;  %vm1007_vm15 = vcmp.gt.f32.partialorder %v989_v28, 0.0 }
 0x425   :  { %v1927_v27 = vpop.f32.mrf.mxu0  ;;  %1931 = vmatpush3.msra.mxu1 %v1020_v25 }
 0x426   :  { %v999_v29 = vadd.f32 %v1927_v27, %v868_v13  ;;  %1932 = vmatprep.subr.mxu1 %v2069_v50  ;;  %v1014_v42 = vmul.f32 0.01, %v984_v36  ;;  %vm1006_vm3 = vcmp.gt.f32.partialorder %v984_v36, 0.0  ;;  %v1023_v45 = vsel %vm1007_vm15, %v989_v28, %v1015_v39  ;;  %v1232_v13 = vpop.permute.xlu1 %1231  ;;  %v1227_v14 = vpop.permute.xlu0 %1226 }
 0x427   :  { %v993_v32 = vpop.f32.mrf.mxu0  ;;  %1933 = vmatpush3.msra.mxu1 %v1019_v30 }
 0x428   :  { %vm1009_vm13 = vcmp.gt.f32.partialorder %v999_v29, 0.0  ;;  %v1017_v37 = vmul.f32 0.01, %v999_v29  ;;  %v994_v38 = vadd.f32 %v993_v32, %v863_v18  ;;  %1934 = vmatprep.subr.mxu1 %v2069_v50  ;;  %v1022_v47 = vsel %vm1006_vm3, %v984_v36, %v1014_v42 }
 0x429   :  { %1935 = vmatpush3.msra.mxu1 %v1018_v34 }
 0x42a   :  { %vm1008_vm14 = vcmp.gt.f32.partialorder %v994_v38, 0.0  ;;  %v1016_v40 = vmul.f32 0.01, %v994_v38  ;;  %1937 = vmatmul.mubr.msk.f32.vlgmr.msra.gmra.mxu1 %vm255_vm7, %v1728_v35  ;;  %1939 = vmatprep.subr.mxu1 %v2069_v50  ;;  %v1025_v41 = vsel %vm1009_vm13, %v999_v29, %v1017_v37  ;;  %v1222_v16 = vpop.permute.xlu1 %1221  ;;  %v1257_v21 = vpop.permute.xlu0 %1256 }
 0x42b   :  { %1940 = vmatpush3.msra.mxu1 %v1025_v41  ;;  %1947 = vmatprep.mubr.msk.f32.mxu1 %vm2070_vm2, %v2069_v50 }
 0x42c   :  { %1941 = vmatprep.subr.mxu1 %v2069_v50  ;;  %v1024_v44 = vsel %vm1008_vm14, %v994_v38, %v1016_v40 }
 0x42d   :  { %1942 = vmatpush3.msra.mxu1 %v1024_v44  ;;  %v1759_v44 = vld [vmem:[%s2522_s3 + $0x6] sm:$0x3] }
 0x42e   :  { %1943 = vmatprep.subr.mxu1 %v2069_v50  ;;  %v1252_v26 = vpop.permute.xlu1 %1251  ;;  %v1247_v35 = vpop.permute.xlu0 %1246 }
 0x42f   :  { %1944 = vmatpush3.msra.mxu1 %v1023_v45 }
 0x430   :  { %1945 = vmatprep.subr.mxu1 %v2069_v50 }
 0x431   :  { %1946 = vmatpush3.msra.mxu1 %v1022_v47 }
 0x432   :  { %1948 = vmatmul.mubr.msk.f32.vlgmr.msra.gmra.mxu1 %vm255_vm7, %v1731_v46  ;;  %1964 = vmatprep.subr.mxu1 %v2069_v50  ;;  %v1242_v40 = vpop.permute.xlu1 %1241 }
 0x433   :  { %1972 = vmatprep.mubr.msk.f32.mxu1 %vm2070_vm2, %v2069_v50 }
 0x4ea   :  { %v1104_v51 = vpop.f32.mrf.mxu1 }
 0x4eb   :  { %v1105_v52 = vadd.f32 %v1104_v51, %v1033_v49 }
 0x4ec   :  { %v1938_v33 = vpop.f32.mrf.mxu1 }
 0x4ed   :  { %v1190_v53 = vmul.f32 1.442695, %v1105_v52  ;;  %v1194_v54 = vsel %vm413_vm8, %v1105_v52, 0.0 }
 0x4ee   :  { %v1195_v56 = vrot.slane %v1194_v54, 4 }
 0x4ef   :  { %2000 = vpow2.f32 %v1190_v53 }
 0x4f0   :  { %v1196_v57 = vadd.f32 %v1195_v56, %v1194_v54  ;;  %v1762_v54 = vld [vmem:[%s2523_s4 + $0x6] sm:$0x3]  ;;  %s2071_s4 = smov [#allocation2]  }
 0x4f1   :  { %s1622_s12 = sshll.u32 %s2071_s4, 4  ;;  %s1623_s12 = int_to_ptr.vmem [resolvable:$true] %s1622_s12 }
 0x4f2   :  { %v1197_v58 = vrot.slane %v1196_v57, 2  ;;  %v1186_v59 = vpop.f32.mrf.mxu1  ;;  %s2004_s13 = scalar_lea.vmem %s1623_s12, 64  ;;  %p2009_p1 = scmp.lt.s32.totalorder %s1623_s12, %s1623_s12 }
 0x4f3   :  { %v1187_v4 = vadd.f32 %v1186_v59, %v1115_v3  ;;  %p2005_p0 = scmp.ne.s32.totalorder %s1623_s12, %s2004_s13  ;;  %p2010_p2 = scmp.lt.s32.totalorder %s2004_s13, %s2004_s13 }
 0x4f4   :  { %v1198_v61 = vadd.f32 %v1197_v58, %v1196_v57  ;;  %v1949_v62 = vpop.f32.mrf.mxu1  ;;  %v1422_v57 = vpop.permute.xlu0 %1421 }
 0x4f5   :  { %p2011_p3 = por %p2010_p2, %p2009_p1 }
 0x4f6   :  { %v1199_v0 = vrot.slane %v1198_v61, 1 }
 0x4f7   :  { %p2012_p4 = pnand %p2011_p3, %p2005_p0 }
 0x4f8   :  { %v1200_v63 = vadd.f32 %v1199_v0, %v1198_v61 }
 0x4fa   :  { %v2444_v1 = vadd.f32 %v1200_v63, %v2381_v55  ;;  %v1736_v55 = vld [vmem:[%s2520_s1 + $0xd0] sm:$0xff] }
 0x4fc   :  { %v2001_v2 = vpop.eup %2000 }
 0x4fd   :  { %v1192_v5 = vmul.f32 %v2001_v2, %v2320_v43  ;;  %v1737_v43 = vld [vmem:[%s2520_s1 + $0xd8] sm:$0xff] }
 0x4ff   :  { %v2447_v6 = vadd.f32 %v1192_v5, %v1187_v4 }
 0x501   :  { %1594 = vst.msk [vmem:[#allocation2 + $0x2] sm:$0x3] %vm413_vm8, %v2447_v6  ;;  %1950 = vmatprep.subr.msk.mxu0 %vm115_vm0, %v2447_v6  ;;  %v1605_v5 = vmul.f32 %v2447_v6, %v2447_v6 }
 0x502   :  { %1951 = vmatpush3.msk.msra.mxu0 %vm115_vm0, %v2447_v6 }
 0x503   :  { %1953 = vmatmul.mubr.msk.f32.vlgmr.msra.gmra.mxu0 %vm90_vm1, %v1735_v7 }
 0x504   :  { %1955 = vmatprep.mubr.msk.f32.mxu0 %vm90_vm1, %v1736_v55 }
 0x507   :  { %1956 = vmatmul.mubr.msk.f32.gmra.mxu0 %vm90_vm1, %v1737_v43  ;;  %v1606_v43 = vsel %vm413_vm8, %v1605_v5, 0.0 }
 0x508   :  { %1958 = vmatprep.mubr.msk.f32.mxu0 %vm90_vm1, %v1738_v8 }
 0x50b   :  { %1959 = vmatmul.mubr.msk.f32.gmra.mxu0 %vm90_vm1, %v1739_v9  ;;  %v1607_v9 = vrot.slane %v1606_v43, 4 }
 0x50c   :  { %1961 = vmatprep.mubr.msk.f32.mxu0 %vm90_vm1, %v1740_v10 }
 0x50d   :  { %v1608_v6 = vadd.f32 %v1607_v9, %v1606_v43 }
 0x50f   :  { %1962 = vmatmul.mubr.msk.f32.gmra.mxu0 %vm90_vm1, %v1741_v11 }
 0x5c3   :  { %v1954_v15 = vpop.f32.mrf.mxu0 }
 0x5c4   :  { %v1358_v19 = vadd.f32 %v1954_v15, %v1227_v14 }
 0x5c5   :  { %v1352_v17 = vpop.f32.mrf.mxu0 }
 0x5c6   :  { %v1353_v22 = vadd.f32 %v1352_v17, %v1222_v16  ;;  %v1400_v28 = vmul.f32 0.01, %v1358_v19  ;;  %vm1392_vm1 = vcmp.gt.f32.partialorder %v1358_v19, 0.0  ;;  %v1609_v17 = vrot.slane %v1608_v6, 2 }
 0x5c7   :  { %v1957_v18 = vpop.f32.mrf.mxu0 }
 0x5c8   :  { %v1368_v20 = vadd.f32 %v1957_v18, %v1237_v12  ;;  %v1399_v31 = vmul.f32 0.01, %v1353_v22  ;;  %vm1391_vm5 = vcmp.gt.f32.partialorder %v1353_v22, 0.0  ;;  %v1408_v39 = vsel %vm1392_vm1, %v1358_v19, %v1400_v28  ;;  %v1504_v12 = vpop.permute.xlu1 %1503 }
 0x5c9   :  { %v1362_v23 = vpop.f32.mrf.mxu0 }
 0x5ca   :  { %vm1394_vm0 = vcmp.gt.f32.partialorder %v1368_v20, 0.0  ;;  %v1402_v24 = vmul.f32 0.01, %v1368_v20  ;;  %v1363_v25 = vadd.f32 %v1362_v23, %v1232_v13  ;;  %v1407_v42 = vsel %vm1391_vm5, %v1353_v22, %v1399_v31 }
 0x5cb   :  { %v1960_v27 = vpop.f32.mrf.mxu0 }
 0x5cc   :  { %vm1393_vm4 = vcmp.gt.f32.partialorder %v1363_v25, 0.0  ;;  %v1401_v29 = vmul.f32 0.01, %v1363_v25  ;;  %v1410_v30 = vsel %vm1394_vm0, %v1368_v20, %v1402_v24  ;;  %v1378_v37 = vadd.f32 %v1960_v27, %v1247_v35 }
 0x5cd   :  { %v1372_v32 = vpop.f32.mrf.mxu0  ;;  %1965 = vmatpush3.msra.mxu1 %v1410_v30 }
 0x5ce   :  { %1966 = vmatprep.subr.mxu1 %v2069_v50  ;;  %v1409_v34 = vsel %vm1393_vm4, %v1363_v25, %v1401_v29  ;;  %v1373_v45 = vadd.f32 %v1372_v32, %v1242_v40  ;;  %v1404_v48 = vmul.f32 0.01, %v1378_v37  ;;  %vm1396_vm10 = vcmp.gt.f32.partialorder %v1378_v37, 0.0 }
 0x5cf   :  { %v1963_v36 = vpop.f32.mrf.mxu0  ;;  %1967 = vmatpush3.msra.mxu1 %v1409_v34 }
 0x5d0   :  { %v1388_v38 = vadd.f32 %v1963_v36, %v1257_v21  ;;  %1968 = vmatprep.subr.mxu1 %v2069_v50  ;;  %v1403_v52 = vmul.f32 0.01, %v1373_v45  ;;  %vm1395_vm11 = vcmp.gt.f32.partialorder %v1373_v45, 0.0  ;;  %v1412_v53 = vsel %vm1396_vm10, %v1378_v37, %v1404_v48 }
 0x5d1   :  { %v1382_v41 = vpop.f32.mrf.mxu0  ;;  %1969 = vmatpush3.msra.mxu1 %v1408_v39 }
 0x5d2   :  { %vm1398_vm6 = vcmp.gt.f32.partialorder %v1388_v38, 0.0  ;;  %v1406_v46 = vmul.f32 0.01, %v1388_v38  ;;  %v1383_v47 = vadd.f32 %v1382_v41, %v1252_v26  ;;  %1970 = vmatprep.subr.mxu1 %v2069_v50  ;;  %v1411_v56 = vsel %vm1395_vm11, %v1373_v45, %v1403_v52 }
 0x5d3   :  { %1971 = vmatpush3.msra.mxu1 %v1407_v42 }
 0x5d4   :  { %vm1397_vm9 = vcmp.gt.f32.partialorder %v1383_v47, 0.0  ;;  %v1405_v49 = vmul.f32 0.01, %v1383_v47  ;;  %1973 = vmatmul.mubr.msk.f32.vlgmr.msra.gmra.mxu1 %vm255_vm7, %v1759_v44  ;;  %1975 = vmatprep.subr.mxu1 %v2069_v50  ;;  %v1414_v51 = vsel %vm1398_vm6, %v1388_v38, %v1406_v46 }
 0x5d5   :  { %1976 = vmatpush3.msra.mxu1 %v1414_v51  ;;  %1983 = vmatprep.mubr.msk.f32.mxu1 %vm2070_vm2, %v2069_v50  ;;  %vm1595_vm2 = vcmask 57344  }
 0x5d6   :  { %1977 = vmatprep.subr.mxu1 %v2069_v50  ;;  %v1413_v33 = vsel %vm1397_vm9, %v1383_v47, %v1405_v49 }
 0x5d7   :  { %1978 = vmatpush3.msra.mxu1 %v1413_v33 }
 0x5d8   :  { %1979 = vmatprep.subr.mxu1 %v2069_v50 }
 0x5d9   :  { %1980 = vmatpush3.msra.mxu1 %v1412_v53 }
 0x5da   :  { %1981 = vmatprep.subr.mxu1 %v2069_v50 }
 0x5db   :  { %1982 = vmatpush3.msra.mxu1 %v1411_v56 }
 0x5dc   :  { %1984 = vmatmul.mubr.msk.f32.vlgmr.msra.gmra.mxu1 %vm255_vm7, %v1762_v54 }
 0x694   :  { %v1493_v58 = vpop.f32.mrf.mxu1 }
 0x695   :  { %v1494_v59 = vadd.f32 %v1493_v58, %v1422_v57 }
 0x696   :  { %v1974_v61 = vpop.f32.mrf.mxu1 }
 0x697   :  { %v1579_v62 = vmul.f32 1.442695, %v1494_v59  ;;  %v1583_v0 = vsel %vm413_vm8, %v1494_v59, 0.0 }
 0x698   :  { %v1584_v63 = vrot.slane %v1583_v0, 4 }
 0x699   :  { %2002 = vpow2.f32 %v1579_v62 }
 0x69a   :  { %v1585_v2 = vadd.f32 %v1584_v63, %v1583_v0 }
 0x69c   :  { %v1586_v3 = vrot.slane %v1585_v2, 2  ;;  %v1575_v4 = vpop.f32.mrf.mxu1 }
 0x69d   :  { %v1576_v13 = vadd.f32 %v1575_v4, %v1504_v12 }
 0x69e   :  { %v1587_v50 = vadd.f32 %v1586_v3, %v1585_v2  ;;  %v1985_v7 = vpop.f32.mrf.mxu1 }
 0x6a0   :  { %v1588_v55 = vrot.slane %v1587_v50, 1 }
 0x6a2   :  { %v1589_v8 = vadd.f32 %v1588_v55, %v1587_v50 }
 0x6a4   :  { %v1591_v10 = vadd.f32 %v2444_v1, %v1589_v8 }
 0x6a6   :  { %v2003_v11 = vpop.eup %2002  ;;  %1596 = vst.msk [vmem:[#allocation6] sm:$0x1] %vm1595_vm2, %v1591_v10 }
 0x6a7   :  { %v1581_v14 = vmul.f32 %v2003_v11, %v2384_v60 }
 0x6a9   :  { %v1582_v15 = vadd.f32 %v1581_v14, %v1576_v13 }
 0x6ab   :  { %1592 = vst.msk [vmem:[#allocation2] sm:$0x3] %vm413_vm8, %v1582_v15  ;;  %v1597_v16 = vmul.f32 %v1582_v15, %v1582_v15 }
 0x6ac   :  { %2015 = shalt.err (!%p2012_p4)
}
 0x6ad   :  { %s2072_s14 = smov 32   ;;  %s2073_s15 = smov 2   ;;  %v1598_v60 = vsel %vm413_vm8, %v1597_v16, 0.0  ;;  %v1610_v19 = vadd.f32 %v1609_v17, %v1608_v6 }
 0x6ae   :  { %1628 = dma.vmem_to_hbm [thread:$0]  %s1623_s12, 64, %s2526_s7, [#allocation3], %s2072_s14, %s2072_s14, %s2073_s15   ;;  %v1599_v1 = vrot.slane %v1598_v60, 4 }
 0x6af   :  { %v1611_v22 = vrot.slane %v1610_v19, 1  ;;  %s2074_s18 = smov [#allocation4]   ;;  %s2075_s20 = smov [#allocation6]  }
 0x6b0   :  { %v1600_v18 = vadd.f32 %v1599_v1, %v1598_v60  ;;  %s1635_s19 = sshll.u32 %s2074_s18, 4  ;;  %s1645_s21 = sshll.u32 %s2075_s20, 4  ;;  %s1636_s19 = int_to_ptr.vmem [resolvable:$true] %s1635_s19  ;;  %s1646_s21 = int_to_ptr.vmem [resolvable:$true] %s1645_s21 }
 0x6b1   :  { %v1612_v25 = vadd.f32 %v1611_v22, %v1610_v19  ;;  %s2024_s7 = scalar_lea.vmem %s1636_s19, 16  ;;  %s2028_s22 = scalar_lea.vmem %s1636_s19, 32 }
 0x6b2   :  { %v1601_v20 = vrot.slane %v1600_v18, 2  ;;  %p2025_p5 = scmp.ne.s32.totalorder %s1636_s19, %s2024_s7  ;;  %p2029_p6 = scmp.lt.s32.totalorder %s1636_s19, %s1636_s19 }
 0x6b3   :  { %p2030_p7 = scmp.lt.s32.totalorder %s2028_s22, %s2024_s7 }
 0x6b4   :  { %v1602_v21 = vadd.f32 %v1601_v20, %v1600_v18 }
 0x6b5   :  { %p2031_p8 = por %p2030_p7, %p2029_p6 }
 0x6b6   :  { %v1603_v23 = vrot.slane %v1602_v21, 1 }
 0x6b7   :  { %p2032_p9 = pnand %p2031_p8, %p2025_p5 }
 0x6b8   :  { %v1604_v24 = vadd.f32 %v1603_v23, %v1602_v21 }
 0x6ba   :  { %v1613_v26 = vadd.f32 %v1612_v25, %v1604_v24 }
 0x6bc   :  { %v1614_v27 = vmul.f32 -0.5, %v1613_v26 }
 0x6be   :  { %v1765_v28 = vadd.f32 -3.675754, %v1614_v27 }
 0x6c0   :  { %1616 = vst.msk [vmem:[#allocation4] sm:$0x1] %vm1595_vm2, %v1765_v28 }
 0x6c1   :  { %2035 = shalt.err (!%p2032_p9)
}
 0x6c2   :  { %1638 = dma.vmem_to_hbm [thread:$0]  %s1636_s19, 16, %s2527_s8, [#allocation5]  }
 0x6c3   :  { %s2044_s6 = scalar_lea.vmem %s1646_s21, 16  ;;  %s2048_s23 = scalar_lea.vmem %s1646_s21, 32 }
 0x6c4   :  { %p2045_p10 = scmp.ne.s32.totalorder %s1646_s21, %s2044_s6  ;;  %p2049_p11 = scmp.lt.s32.totalorder %s1646_s21, %s1646_s21 }
 0x6c5   :  { %p2050_p12 = scmp.lt.s32.totalorder %s2048_s23, %s2044_s6 }
 0x6c7   :  { %p2051_p13 = por %p2050_p12, %p2049_p11 }
 0x6c9   :  { %p2052_p0 = pnand %p2051_p13, %p2045_p10 }
 0x6cb   :  { %2055 = shalt.err (!%p2052_p0)
}
 0x6cc   :  { %1648 = dma.vmem_to_hbm [thread:$0]  %s1646_s21, 16, %s2528_s9, [#allocation5]  }
 0x6cd   :  { %2064 = dma.done.wait [#allocation3], 64  }
 0x6ce   :  { %2065 = vsyncadd [#allocation3], 4294967232 }
 0x6cf   :  { %2066 = dma.done.wait [#allocation5], 32  }
 0x6d0   :  { %2067 = vsyncadd [#allocation5], 4294967264 }
 0x6d1   :  { %1658 = vsyncpa [#allocation3], 1 }
 0x6d2   :  { %1659 = vsyncpa [#allocation5], 1 }

</bundles_post_ra>
